<compile_context>
chip_gen: v5e
topology: v5e:2x2
jax: 0.10.0
libtpu: 0.0.40
codegen_flags: <defaults>
</compile_context>

<pallas_src>
import functools
import math

import jax
import jax.numpy as jnp
from jax import lax
from jax.experimental import pallas as pl
from jax.experimental.pallas import tpu as pltpu

KSIZE = 7
PAD = (KSIZE - 1) // 2


def _spatial_gate_kernel(x_ref, p_ref, o_ref, pad_ref, *, width, vpad):
    # x_ref   : (Nb, C, H*W) VMEM block, native dtype, lane-dense last dim.
    # p_ref   : (2*7*7 + 1,) SMEM scalars = BN-folded conv weights + bias.
    # o_ref   : (Nb, C, H*W) VMEM output block.
    # pad_ref : (2, Nb, (H + 2*vpad) * W) f32 scratch: vertically zero-padded,
    #           flat (lane-dense) pooled planes for the 7x7 conv.
    Nb, C, HW = x_ref.shape
    W = width
    padhw = pad_ref.shape[-1]
    base = vpad * W                                     # flat offset of row 0

    x = x_ref[...]
    xf = x.astype(jnp.float32)

    # --- ChannelPool: max / mean over channels on the lane-dense view ---
    cmax = jnp.max(x, axis=1).astype(jnp.float32)       # (Nb, HW)
    cmean = jnp.sum(xf, axis=1) * (1.0 / C)             # (Nb, HW)

    # Zero only the vertical pad strips.  Re-done every step: with "parallel"
    # batch semantics each TensorCore owns its own scratch and only one of
    # them would execute program_id == 0.  Both strips (and the pooled-plane
    # store below) are full-width lane stores.
    pad_ref[:, :, 0:base] = jnp.zeros((2, Nb, base), jnp.float32)
    pad_ref[:, :, base + HW:padhw] = jnp.zeros((2, Nb, padhw - base - HW),
                                               jnp.float32)
    pad_ref[0, :, base:base + HW] = cmax
    pad_ref[1, :, base:base + HW] = cmean

    # --- 7x7 conv (2 -> 1 channels, stride 1, pad 3) with BN folded in.
    # Each (kh, kw) tap is a static lane-shifted slice of the flat padded
    # plane; out-of-row (horizontal-pad) columns are masked per kw.  The conv
    # stays on the VPU (a 2->1-channel conv cannot utilize the MXU). ---
    col_in_row = lax.broadcasted_iota(jnp.int32, (1, HW), 1) % W
    parts = []
    for kw in range(KSIZE):
        d = kw - PAD
        acc0 = None
        acc1 = None
        for kh in range(KSIZE):
            start = base + (kh - PAD) * W + d
            blk = pad_ref[:, :, start:start + HW]       # (2, Nb, HW)
            w0 = p_ref[0 * KSIZE * KSIZE + kh * KSIZE + kw]
            w1 = p_ref[1 * KSIZE * KSIZE + kh * KSIZE + kw]
            t0 = w0 * blk[0]
            t1 = w1 * blk[1]
            acc0 = t0 if acc0 is None else acc0 + t0
            acc1 = t1 if acc1 is None else acc1 + t1
        valid = jnp.logical_and(col_in_row + d >= 0, col_in_row + d < W)
        parts.append(jnp.where(valid, acc0 + acc1, 0.0))
    # Tree-sum the 7 independent per-kw partials (short VPU dep chains).
    while len(parts) > 1:
        nxt = [a + b for a, b in zip(parts[0::2], parts[1::2])]
        if len(parts) % 2:
            nxt.append(parts[-1])
        parts = nxt
    conv = parts[0] + p_ref[2 * KSIZE * KSIZE]          # (Nb, HW)

    # --- sigmoid gate (exp on the EUP); the gate is only O(HW) elements, so
    # the exact divide is negligible next to the main C*HW stream. ---
    gate = pl.reciprocal(1.0 + jnp.exp(-conv), approx=False)

    # Dominant lane-dense multiply + full-width store.
    o_ref[...] = (xf * gate[:, None, :]).astype(o_ref.dtype)


def spatial_gate(x, conv_w, bn_gamma, bn_beta, bn_mean, bn_var,
                 eps=1e-5, batch_block=None):
    """SpatialGate forward.  x: (N, C, H, W); conv_w: (1, 2, 7, 7); bn_*: (1,)."""
    # TODO(synk): PyTorch training-mode BatchNorm2d uses batch statistics; only
    # inference (running-stats) semantics are implemented here (BN folded into
    # the conv weights/bias).
    N, C, H, W = x.shape
    HW = H * W

    # Fold eval-mode BatchNorm into the conv weights / bias on the host.
    s = bn_gamma / jnp.sqrt(bn_var + eps)                        # (1,)
    w_folded = (conv_w * s[:, None, None, None]).reshape(-1)     # (2*7*7,)
    bias = bn_beta - bn_mean * s                                 # (1,)
    params = jnp.concatenate([w_folded, bias]).astype(jnp.float32)

    # Contiguous NCHW -> (N, C, H*W): metadata-only reshape, native dtype.
    x_flat = x.reshape(N, C, HW)

    # Vertical pad rows for the flat conv scratch: at least PAD + ceil(PAD/W)
    # so every (kh, kw) tap stays in-bounds; round up so the valid region
    # starts on a 128-lane boundary when that is cheap.
    vpad = PAD + (PAD + W - 1) // W
    p0 = 128 // math.gcd(W, 128)
    if p0 <= 16:
        vpad = ((vpad + p0 - 1) // p0) * p0
    padhw = (H + 2 * vpad) * W

    # Largest batch block whose double-buffered in+out blocks plus the conv
    # scratch fit a conservative VMEM budget (v7x: 64 MiB physical, 32 MiB
    # default scoped).  For huge C*H*W this degrades to Nb=1; tiling over C
    # would be the next step for such shapes.
    if batch_block is None:
        itemsize = jnp.dtype(x.dtype).itemsize
        budget = 8 * 1024 * 1024
        batch_block = 1
        for cand in range(N, 0, -1):
            if N % cand != 0:
                continue
            need = 4 * cand * C * HW * itemsize + 2 * cand * padhw * 4
            if need <= budget:
                batch_block = cand
                break
    Nb = batch_block
    assert N % Nb == 0

    kernel = functools.partial(_spatial_gate_kernel, width=W, vpad=vpad)
    out_flat = pl.pallas_call(
        kernel,
        out_shape=jax.ShapeDtypeStruct((N, C, HW), x.dtype),
        grid=(N // Nb,),
        in_specs=[
            pl.BlockSpec((Nb, C, HW), lambda n: (n, 0, 0)),
            pl.BlockSpec(memory_space=pltpu.MemorySpace.SMEM),
        ],
        out_specs=pl.BlockSpec((Nb, C, HW), lambda n: (n, 0, 0)),
        scratch_shapes=[
            pltpu.VMEM((2, Nb, padhw), jnp.float32),
        ],
        compiler_params=pltpu.CompilerParams(
            # Batch steps are independent -> shard across v7x's 2 TensorCores.
            dimension_semantics=("parallel",),
        ),
    )(x_flat, params)
    return out_flat.reshape(N, C, H, W)


def spatial_gate_ref(x, conv_w, bn_gamma, bn_beta, bn_mean, bn_var, eps=1e-5):
    """Pure-JAX reference mirroring the PyTorch module (eval-mode BN)."""
    cmax = jnp.max(x, axis=1, keepdims=True)
    cmean = jnp.mean(x, axis=1, keepdims=True)
    pooled = jnp.concatenate([cmax, cmean], axis=1)              # (N, 2, H, W)
    conv = lax.conv_general_dilated(
        pooled, conv_w, window_strides=(1, 1),
        padding=((PAD, PAD), (PAD, PAD)),
        dimension_numbers=("NCHW", "OIHW", "NCHW"))
    s = bn_gamma / jnp.sqrt(bn_var + eps)
    bn = conv * s[None, :, None, None] + (bn_beta - bn_mean * s)[None, :, None, None]
    gate = jax.nn.sigmoid(bn)
    return x * gate


if __name__ == "__main__":
    key = jax.random.PRNGKey(0)
    kx, kw, kg, kb = jax.random.split(key, 4)

    N, C, H, W = 2, 4, 16, 16
    x = jax.random.normal(kx, (N, C, H, W), dtype=jnp.float32)

    # Deterministic synthetic parameters (shapes from SpatialConv(2, 1, 7)):
    conv_w = 0.1 * jax.random.normal(kw, (1, 2, KSIZE, KSIZE), dtype=jnp.float32)
    bn_gamma = jnp.ones((1,), jnp.float32) + 0.1 * jax.random.normal(kg, (1,), dtype=jnp.float32)
    bn_beta = 0.1 * jax.random.normal(kb, (1,), dtype=jnp.float32)
    bn_mean = jnp.zeros((1,), jnp.float32)
    bn_var = jnp.ones((1,), jnp.float32)

    out = jax.block_until_ready(
        spatial_gate(x, conv_w, bn_gamma, bn_beta, bn_mean, bn_var))
    ref = spatial_gate_ref(x, conv_w, bn_gamma, bn_beta, bn_mean, bn_var)

    assert out.shape == x.shape and out.dtype == x.dtype
    assert jnp.allclose(out, ref, atol=1e-4, rtol=1e-4), \
        f"max abs err = {jnp.max(jnp.abs(out - ref))}"
    print("KERNEL_OK")
</pallas_src>

<mosaic_0001>
module attributes {stable_mosaic.version = 11 : i64} {
  func.func @_spatial_gate_kernel(%arg0: i32, %arg1: memref<2x4x256xf32, #tpu.memory_space<vmem>>, %arg2: memref<99xf32, #tpu.memory_space<smem>>, %arg3: memref<2x4x256xf32, #tpu.memory_space<vmem>>, %arg4: memref<2x2x512xf32, #tpu.memory_space<vmem>>) attributes {dimension_semantics = [#tpu.dimension_semantics<parallel>], iteration_bounds = array<i64: 1>, scalar_prefetch = 0 : i64, scratch_operands = 1 : i64, tpu.core_type = #tpu.core_type<tc>, window_params = [{transform_indices = @transform_0, window_bounds = array<i64: 2, 4, 256>}, {transform_indices = @transform_1, window_bounds = array<i64: 99>}, {transform_indices = @transform_2, window_bounds = array<i64: 2, 4, 256>}]} {
    %c0 = arith.constant 0 : index
    %c0_0 = arith.constant 0 : index
    %c0_1 = arith.constant 0 : index
    %0 = vector.load %arg1[%c0, %c0_0, %c0_1] : memref<2x4x256xf32, #tpu.memory_space<vmem>>, vector<2x4x256xf32>
    %cst = arith.constant dense<0xFF800000> : vector<2x256xf32>
    %1 = vector.multi_reduction <maximumf>, %0, %cst [1] : vector<2x4x256xf32> to vector<2x256xf32>
    %cst_2 = arith.constant dense<0.000000e+00> : vector<2x256xf32>
    %2 = vector.multi_reduction <add>, %0, %cst_2 [1] : vector<2x4x256xf32> to vector<2x256xf32>
    %cst_3 = arith.constant 2.500000e-01 : f32
    %3 = vector.broadcast %cst_3 : f32 to vector<2x256xf32>
    %4 = arith.mulf %2, %3 : vector<2x256xf32>
    %cst_4 = arith.constant 0.000000e+00 : f32
    %5 = vector.broadcast %cst_4 : f32 to vector<2x2x128xf32>
    %c0_5 = arith.constant 0 : index
    %c0_6 = arith.constant 0 : index
    %c0_7 = arith.constant 0 : index
    %6 = vector.load %arg4[%c0_5, %c0_6, %c0_7] : memref<2x2x512xf32, #tpu.memory_space<vmem>>, vector<2x2x128xf32>
    tpu.vector_store %arg4[%c0_5, %c0_6, %c0_7], %5 {strides = array<i32>} : memref<2x2x512xf32, #tpu.memory_space<vmem>>, vector<2x2x128xf32>,
    %cst_8 = arith.constant 0.000000e+00 : f32
    %7 = vector.broadcast %cst_8 : f32 to vector<2x2x128xf32>
    %c0_9 = arith.constant 0 : index
    %c0_10 = arith.constant 0 : index
    %c384 = arith.constant 384 : index
    %8 = vector.load %arg4[%c0_9, %c0_10, %c384] : memref<2x2x512xf32, #tpu.memory_space<vmem>>, vector<2x2x128xf32>
    tpu.vector_store %arg4[%c0_9, %c0_10, %c384], %7 {strides = array<i32>} : memref<2x2x512xf32, #tpu.memory_space<vmem>>, vector<2x2x128xf32>,
    %c0_11 = arith.constant 0 : index
    %c0_12 = arith.constant 0 : index
    %c128 = arith.constant 128 : index
    %9 = vector.load %arg4[%c0_11, %c0_12, %c128] : memref<2x2x512xf32, #tpu.memory_space<vmem>>, vector<1x2x256xf32>
    %10 = vector.shape_cast %9 : vector<1x2x256xf32> to vector<2x256xf32>
    %11 = vector.shape_cast %1 : vector<2x256xf32> to vector<1x2x256xf32>
    tpu.vector_store %arg4[%c0_11, %c0_12, %c128], %11 {strides = array<i32>} : memref<2x2x512xf32, #tpu.memory_space<vmem>>, vector<1x2x256xf32>,
    %c1 = arith.constant 1 : index
    %c0_13 = arith.constant 0 : index
    %c128_14 = arith.constant 128 : index
    %12 = vector.load %arg4[%c1, %c0_13, %c128_14] : memref<2x2x512xf32, #tpu.memory_space<vmem>>, vector<1x2x256xf32>
    %13 = vector.shape_cast %12 : vector<1x2x256xf32> to vector<2x256xf32>
    %14 = vector.shape_cast %4 : vector<2x256xf32> to vector<1x2x256xf32>
    tpu.vector_store %arg4[%c1, %c0_13, %c128_14], %14 {strides = array<i32>} : memref<2x2x512xf32, #tpu.memory_space<vmem>>, vector<1x2x256xf32>,
    %15 = tpu.iota {dimensions = array<i32: 1>} : vector<1x256xi32>
    %c16_i32 = arith.constant 16 : i32
    %c0_i32 = arith.constant 0 : i32
    %16 = arith.cmpi eq, %c16_i32, %c0_i32 : i32
    %c1_i32 = arith.constant 1 : i32
    %17 = arith.select %16, %c1_i32, %c16_i32 : i32
    %18 = vector.broadcast %17 : i32 to vector<1x256xi32>
    %19 = arith.remsi %15, %18 : vector<1x256xi32>
    %c0_i32_15 = arith.constant 0 : i32
    %20 = vector.broadcast %c0_i32_15 : i32 to vector<1x256xi32>
    %21 = arith.cmpi ne, %19, %20 : vector<1x256xi32>
    %c0_i32_16 = arith.constant 0 : i32
    %22 = vector.broadcast %c0_i32_16 : i32 to vector<1x256xi32>
    %23 = arith.cmpi slt, %19, %22 : vector<1x256xi32>
    %c0_i32_17 = arith.constant 0 : i32
    %24 = arith.cmpi slt, %17, %c0_i32_17 : i32
    %25 = vector.broadcast %24 : i1 to vector<1x256xi1>
    %26 = vector.broadcast %25 : vector<1x256xi1> to vector<1x256xi1>
    %27 = arith.xori %23, %26 : vector<1x256xi1>
    %28 = arith.andi %27, %21 : vector<1x256xi1>
    %29 = vector.broadcast %17 : i32 to vector<1x256xi32>
    %30 = arith.addi %19, %29 : vector<1x256xi32>
    %31 = arith.select %28, %30, %19 : vector<1x256xi1>, vector<1x256xi32>
    %c0_18 = arith.constant 0 : index
    %c0_19 = arith.constant 0 : index
    %c77 = arith.constant 77 : index
    %32 = vector.load %arg4[%c0_18, %c0_19, %c77] : memref<2x2x512xf32, #tpu.memory_space<vmem>>, vector<2x2x256xf32>
    %c0_20 = arith.constant 0 : index
    %33 = memref.load %arg2[%c0_20] : memref<99xf32, #tpu.memory_space<smem>>
    %c49 = arith.constant 49 : index
    %34 = memref.load %arg2[%c49] : memref<99xf32, #tpu.memory_space<smem>>
    %35 = vector.extract_strided_slice %32 {offsets = [0, 0, 0], sizes = [1, 2, 256], strides = [1, 1, 1]} : vector<2x2x256xf32> to vector<1x2x256xf32>
    %36 = vector.shape_cast %35 : vector<1x2x256xf32> to vector<2x256xf32>
    %37 = vector.broadcast %33 : f32 to vector<2x256xf32>
    %38 = arith.mulf %37, %36 : vector<2x256xf32>
    %39 = vector.extract_strided_slice %32 {offsets = [1, 0, 0], sizes = [1, 2, 256], strides = [1, 1, 1]} : vector<2x2x256xf32> to vector<1x2x256xf32>
    %40 = vector.shape_cast %39 : vector<1x2x256xf32> to vector<2x256xf32>
    %41 = vector.broadcast %34 : f32 to vector<2x256xf32>
    %42 = arith.mulf %41, %40 : vector<2x256xf32>
    %c0_21 = arith.constant 0 : index
    %c0_22 = arith.constant 0 : index
    %c93 = arith.constant 93 : index
    %43 = vector.load %arg4[%c0_21, %c0_22, %c93] : memref<2x2x512xf32, #tpu.memory_space<vmem>>, vector<2x2x256xf32>
    %c7 = arith.constant 7 : index
    %44 = memref.load %arg2[%c7] : memref<99xf32, #tpu.memory_space<smem>>
    %c56 = arith.constant 56 : index
    %45 = memref.load %arg2[%c56] : memref<99xf32, #tpu.memory_space<smem>>
    %46 = vector.extract_strided_slice %43 {offsets = [0, 0, 0], sizes = [1, 2, 256], strides = [1, 1, 1]} : vector<2x2x256xf32> to vector<1x2x256xf32>
    %47 = vector.shape_cast %46 : vector<1x2x256xf32> to vector<2x256xf32>
    %48 = vector.broadcast %44 : f32 to vector<2x256xf32>
    %49 = arith.mulf %48, %47 : vector<2x256xf32>
    %50 = vector.extract_strided_slice %43 {offsets = [1, 0, 0], sizes = [1, 2, 256], strides = [1, 1, 1]} : vector<2x2x256xf32> to vector<1x2x256xf32>
    %51 = vector.shape_cast %50 : vector<1x2x256xf32> to vector<2x256xf32>
    %52 = vector.broadcast %45 : f32 to vector<2x256xf32>
    %53 = arith.mulf %52, %51 : vector<2x256xf32>
    %54 = arith.addf %38, %49 : vector<2x256xf32>
    %55 = arith.addf %42, %53 : vector<2x256xf32>
    %c0_23 = arith.constant 0 : index
    %c0_24 = arith.constant 0 : index
    %c109 = arith.constant 109 : index
    %56 = vector.load %arg4[%c0_23, %c0_24, %c109] : memref<2x2x512xf32, #tpu.memory_space<vmem>>, vector<2x2x256xf32>
    %c14 = arith.constant 14 : index
    %57 = memref.load %arg2[%c14] : memref<99xf32, #tpu.memory_space<smem>>
    %c63 = arith.constant 63 : index
    %58 = memref.load %arg2[%c63] : memref<99xf32, #tpu.memory_space<smem>>
    %59 = vector.extract_strided_slice %56 {offsets = [0, 0, 0], sizes = [1, 2, 256], strides = [1, 1, 1]} : vector<2x2x256xf32> to vector<1x2x256xf32>
    %60 = vector.shape_cast %59 : vector<1x2x256xf32> to vector<2x256xf32>
    %61 = vector.broadcast %57 : f32 to vector<2x256xf32>
    %62 = arith.mulf %61, %60 : vector<2x256xf32>
    %63 = vector.extract_strided_slice %56 {offsets = [1, 0, 0], sizes = [1, 2, 256], strides = [1, 1, 1]} : vector<2x2x256xf32> to vector<1x2x256xf32>
    %64 = vector.shape_cast %63 : vector<1x2x256xf32> to vector<2x256xf32>
    %65 = vector.broadcast %58 : f32 to vector<2x256xf32>
    %66 = arith.mulf %65, %64 : vector<2x256xf32>
    %67 = arith.addf %54, %62 : vector<2x256xf32>
    %68 = arith.addf %55, %66 : vector<2x256xf32>
    %c0_25 = arith.constant 0 : index
    %c0_26 = arith.constant 0 : index
    %c125 = arith.constant 125 : index
    %69 = vector.load %arg4[%c0_25, %c0_26, %c125] : memref<2x2x512xf32, #tpu.memory_space<vmem>>, vector<2x2x256xf32>
    %c21 = arith.constant 21 : index
    %70 = memref.load %arg2[%c21] : memref<99xf32, #tpu.memory_space<smem>>
    %c70 = arith.constant 70 : index
    %71 = memref.load %arg2[%c70] : memref<99xf32, #tpu.memory_space<smem>>
    %72 = vector.extract_strided_slice %69 {offsets = [0, 0, 0], sizes = [1, 2, 256], strides = [1, 1, 1]} : vector<2x2x256xf32> to vector<1x2x256xf32>
    %73 = vector.shape_cast %72 : vector<1x2x256xf32> to vector<2x256xf32>
    %74 = vector.broadcast %70 : f32 to vector<2x256xf32>
    %75 = arith.mulf %74, %73 : vector<2x256xf32>
    %76 = vector.extract_strided_slice %69 {offsets = [1, 0, 0], sizes = [1, 2, 256], strides = [1, 1, 1]} : vector<2x2x256xf32> to vector<1x2x256xf32>
    %77 = vector.shape_cast %76 : vector<1x2x256xf32> to vector<2x256xf32>
    %78 = vector.broadcast %71 : f32 to vector<2x256xf32>
    %79 = arith.mulf %78, %77 : vector<2x256xf32>
    %80 = arith.addf %67, %75 : vector<2x256xf32>
    %81 = arith.addf %68, %79 : vector<2x256xf32>
    %c0_27 = arith.constant 0 : index
    %c0_28 = arith.constant 0 : index
    %c141 = arith.constant 141 : index
    %82 = vector.load %arg4[%c0_27, %c0_28, %c141] : memref<2x2x512xf32, #tpu.memory_space<vmem>>, vector<2x2x256xf32>
    %c28 = arith.constant 28 : index
    %83 = memref.load %arg2[%c28] : memref<99xf32, #tpu.memory_space<smem>>
    %c77_29 = arith.constant 77 : index
    %84 = memref.load %arg2[%c77_29] : memref<99xf32, #tpu.memory_space<smem>>
    %85 = vector.extract_strided_slice %82 {offsets = [0, 0, 0], sizes = [1, 2, 256], strides = [1, 1, 1]} : vector<2x2x256xf32> to vector<1x2x256xf32>
    %86 = vector.shape_cast %85 : vector<1x2x256xf32> to vector<2x256xf32>
    %87 = vector.broadcast %83 : f32 to vector<2x256xf32>
    %88 = arith.mulf %87, %86 : vector<2x256xf32>
    %89 = vector.extract_strided_slice %82 {offsets = [1, 0, 0], sizes = [1, 2, 256], strides = [1, 1, 1]} : vector<2x2x256xf32> to vector<1x2x256xf32>
    %90 = vector.shape_cast %89 : vector<1x2x256xf32> to vector<2x256xf32>
    %91 = vector.broadcast %84 : f32 to vector<2x256xf32>
    %92 = arith.mulf %91, %90 : vector<2x256xf32>
    %93 = arith.addf %80, %88 : vector<2x256xf32>
    %94 = arith.addf %81, %92 : vector<2x256xf32>
    %c0_30 = arith.constant 0 : index
    %c0_31 = arith.constant 0 : index
    %c157 = arith.constant 157 : index
    %95 = vector.load %arg4[%c0_30, %c0_31, %c157] : memref<2x2x512xf32, #tpu.memory_space<vmem>>, vector<2x2x256xf32>
    %c35 = arith.constant 35 : index
    %96 = memref.load %arg2[%c35] : memref<99xf32, #tpu.memory_space<smem>>
    %c84 = arith.constant 84 : index
    %97 = memref.load %arg2[%c84] : memref<99xf32, #tpu.memory_space<smem>>
    %98 = vector.extract_strided_slice %95 {offsets = [0, 0, 0], sizes = [1, 2, 256], strides = [1, 1, 1]} : vector<2x2x256xf32> to vector<1x2x256xf32>
    %99 = vector.shape_cast %98 : vector<1x2x256xf32> to vector<2x256xf32>
    %100 = vector.broadcast %96 : f32 to vector<2x256xf32>
    %101 = arith.mulf %100, %99 : vector<2x256xf32>
    %102 = vector.extract_strided_slice %95 {offsets = [1, 0, 0], sizes = [1, 2, 256], strides = [1, 1, 1]} : vector<2x2x256xf32> to vector<1x2x256xf32>
    %103 = vector.shape_cast %102 : vector<1x2x256xf32> to vector<2x256xf32>
    %104 = vector.broadcast %97 : f32 to vector<2x256xf32>
    %105 = arith.mulf %104, %103 : vector<2x256xf32>
    %106 = arith.addf %93, %101 : vector<2x256xf32>
    %107 = arith.addf %94, %105 : vector<2x256xf32>
    %c0_32 = arith.constant 0 : index
    %c0_33 = arith.constant 0 : index
    %c173 = arith.constant 173 : index
    %108 = vector.load %arg4[%c0_32, %c0_33, %c173] : memref<2x2x512xf32, #tpu.memory_space<vmem>>, vector<2x2x256xf32>
    %c42 = arith.constant 42 : index
    %109 = memref.load %arg2[%c42] : memref<99xf32, #tpu.memory_space<smem>>
    %c91 = arith.constant 91 : index
    %110 = memref.load %arg2[%c91] : memref<99xf32, #tpu.memory_space<smem>>
    %111 = vector.extract_strided_slice %108 {offsets = [0, 0, 0], sizes = [1, 2, 256], strides = [1, 1, 1]} : vector<2x2x256xf32> to vector<1x2x256xf32>
    %112 = vector.shape_cast %111 : vector<1x2x256xf32> to vector<2x256xf32>
    %113 = vector.broadcast %109 : f32 to vector<2x256xf32>
    %114 = arith.mulf %113, %112 : vector<2x256xf32>
    %115 = vector.extract_strided_slice %108 {offsets = [1, 0, 0], sizes = [1, 2, 256], strides = [1, 1, 1]} : vector<2x2x256xf32> to vector<1x2x256xf32>
    %116 = vector.shape_cast %115 : vector<1x2x256xf32> to vector<2x256xf32>
    %117 = vector.broadcast %110 : f32 to vector<2x256xf32>
    %118 = arith.mulf %117, %116 : vector<2x256xf32>
    %119 = arith.addf %106, %114 : vector<2x256xf32>
    %120 = arith.addf %107, %118 : vector<2x256xf32>
    %c-3_i32 = arith.constant -3 : i32
    %121 = vector.broadcast %c-3_i32 : i32 to vector<1x256xi32>
    %122 = arith.addi %31, %121 : vector<1x256xi32>
    %c0_i32_34 = arith.constant 0 : i32
    %123 = vector.broadcast %c0_i32_34 : i32 to vector<1x256xi32>
    %124 = arith.cmpi sge, %122, %123 : vector<1x256xi32>
    %c-3_i32_35 = arith.constant -3 : i32
    %125 = vector.broadcast %c-3_i32_35 : i32 to vector<1x256xi32>
    %126 = arith.addi %31, %125 : vector<1x256xi32>
    %c16_i32_36 = arith.constant 16 : i32
    %127 = vector.broadcast %c16_i32_36 : i32 to vector<1x256xi32>
    %128 = arith.cmpi slt, %126, %127 : vector<1x256xi32>
    %129 = arith.andi %124, %128 : vector<1x256xi1>
    %130 = arith.addf %119, %120 : vector<2x256xf32>
    %cst_37 = arith.constant 0.000000e+00 : f32
    %131 = vector.shape_cast %129 : vector<1x256xi1> to vector<1x256xi1>
    %132 = vector.broadcast %131 : vector<1x256xi1> to vector<2x256xi1>
    %133 = vector.broadcast %cst_37 : f32 to vector<2x256xf32>
    %134 = arith.select %132, %130, %133 : vector<2x256xi1>, vector<2x256xf32>
    %c0_38 = arith.constant 0 : index
    %c0_39 = arith.constant 0 : index
    %c78 = arith.constant 78 : index
    %135 = vector.load %arg4[%c0_38, %c0_39, %c78] : memref<2x2x512xf32, #tpu.memory_space<vmem>>, vector<2x2x256xf32>
    %c1_40 = arith.constant 1 : index
    %136 = memref.load %arg2[%c1_40] : memref<99xf32, #tpu.memory_space<smem>>
    %c50 = arith.constant 50 : index
    %137 = memref.load %arg2[%c50] : memref<99xf32, #tpu.memory_space<smem>>
    %138 = vector.extract_strided_slice %135 {offsets = [0, 0, 0], sizes = [1, 2, 256], strides = [1, 1, 1]} : vector<2x2x256xf32> to vector<1x2x256xf32>
    %139 = vector.shape_cast %138 : vector<1x2x256xf32> to vector<2x256xf32>
    %140 = vector.broadcast %136 : f32 to vector<2x256xf32>
    %141 = arith.mulf %140, %139 : vector<2x256xf32>
    %142 = vector.extract_strided_slice %135 {offsets = [1, 0, 0], sizes = [1, 2, 256], strides = [1, 1, 1]} : vector<2x2x256xf32> to vector<1x2x256xf32>
    %143 = vector.shape_cast %142 : vector<1x2x256xf32> to vector<2x256xf32>
    %144 = vector.broadcast %137 : f32 to vector<2x256xf32>
    %145 = arith.mulf %144, %143 : vector<2x256xf32>
    %c0_41 = arith.constant 0 : index
    %c0_42 = arith.constant 0 : index
    %c94 = arith.constant 94 : index
    %146 = vector.load %arg4[%c0_41, %c0_42, %c94] : memref<2x2x512xf32, #tpu.memory_space<vmem>>, vector<2x2x256xf32>
    %c8 = arith.constant 8 : index
    %147 = memref.load %arg2[%c8] : memref<99xf32, #tpu.memory_space<smem>>
    %c57 = arith.constant 57 : index
    %148 = memref.load %arg2[%c57] : memref<99xf32, #tpu.memory_space<smem>>
    %149 = vector.extract_strided_slice %146 {offsets = [0, 0, 0], sizes = [1, 2, 256], strides = [1, 1, 1]} : vector<2x2x256xf32> to vector<1x2x256xf32>
    %150 = vector.shape_cast %149 : vector<1x2x256xf32> to vector<2x256xf32>
    %151 = vector.broadcast %147 : f32 to vector<2x256xf32>
    %152 = arith.mulf %151, %150 : vector<2x256xf32>
    %153 = vector.extract_strided_slice %146 {offsets = [1, 0, 0], sizes = [1, 2, 256], strides = [1, 1, 1]} : vector<2x2x256xf32> to vector<1x2x256xf32>
    %154 = vector.shape_cast %153 : vector<1x2x256xf32> to vector<2x256xf32>
    %155 = vector.broadcast %148 : f32 to vector<2x256xf32>
    %156 = arith.mulf %155, %154 : vector<2x256xf32>
    %157 = arith.addf %141, %152 : vector<2x256xf32>
    %158 = arith.addf %145, %156 : vector<2x256xf32>
    %c0_43 = arith.constant 0 : index
    %c0_44 = arith.constant 0 : index
    %c110 = arith.constant 110 : index
    %159 = vector.load %arg4[%c0_43, %c0_44, %c110] : memref<2x2x512xf32, #tpu.memory_space<vmem>>, vector<2x2x256xf32>
    %c15 = arith.constant 15 : index
    %160 = memref.load %arg2[%c15] : memref<99xf32, #tpu.memory_space<smem>>
    %c64 = arith.constant 64 : index
    %161 = memref.load %arg2[%c64] : memref<99xf32, #tpu.memory_space<smem>>
    %162 = vector.extract_strided_slice %159 {offsets = [0, 0, 0], sizes = [1, 2, 256], strides = [1, 1, 1]} : vector<2x2x256xf32> to vector<1x2x256xf32>
    %163 = vector.shape_cast %162 : vector<1x2x256xf32> to vector<2x256xf32>
    %164 = vector.broadcast %160 : f32 to vector<2x256xf32>
    %165 = arith.mulf %164, %163 : vector<2x256xf32>
    %166 = vector.extract_strided_slice %159 {offsets = [1, 0, 0], sizes = [1, 2, 256], strides = [1, 1, 1]} : vector<2x2x256xf32> to vector<1x2x256xf32>
    %167 = vector.shape_cast %166 : vector<1x2x256xf32> to vector<2x256xf32>
    %168 = vector.broadcast %161 : f32 to vector<2x256xf32>
    %169 = arith.mulf %168, %167 : vector<2x256xf32>
    %170 = arith.addf %157, %165 : vector<2x256xf32>
    %171 = arith.addf %158, %169 : vector<2x256xf32>
    %c0_45 = arith.constant 0 : index
    %c0_46 = arith.constant 0 : index
    %c126 = arith.constant 126 : index
    %172 = vector.load %arg4[%c0_45, %c0_46, %c126] : memref<2x2x512xf32, #tpu.memory_space<vmem>>, vector<2x2x256xf32>
    %c22 = arith.constant 22 : index
    %173 = memref.load %arg2[%c22] : memref<99xf32, #tpu.memory_space<smem>>
    %c71 = arith.constant 71 : index
    %174 = memref.load %arg2[%c71] : memref<99xf32, #tpu.memory_space<smem>>
    %175 = vector.extract_strided_slice %172 {offsets = [0, 0, 0], sizes = [1, 2, 256], strides = [1, 1, 1]} : vector<2x2x256xf32> to vector<1x2x256xf32>
    %176 = vector.shape_cast %175 : vector<1x2x256xf32> to vector<2x256xf32>
    %177 = vector.broadcast %173 : f32 to vector<2x256xf32>
    %178 = arith.mulf %177, %176 : vector<2x256xf32>
    %179 = vector.extract_strided_slice %172 {offsets = [1, 0, 0], sizes = [1, 2, 256], strides = [1, 1, 1]} : vector<2x2x256xf32> to vector<1x2x256xf32>
    %180 = vector.shape_cast %179 : vector<1x2x256xf32> to vector<2x256xf32>
    %181 = vector.broadcast %174 : f32 to vector<2x256xf32>
    %182 = arith.mulf %181, %180 : vector<2x256xf32>
    %183 = arith.addf %170, %178 : vector<2x256xf32>
    %184 = arith.addf %171, %182 : vector<2x256xf32>
    %c0_47 = arith.constant 0 : index
    %c0_48 = arith.constant 0 : index
    %c142 = arith.constant 142 : index
    %185 = vector.load %arg4[%c0_47, %c0_48, %c142] : memref<2x2x512xf32, #tpu.memory_space<vmem>>, vector<2x2x256xf32>
    %c29 = arith.constant 29 : index
    %186 = memref.load %arg2[%c29] : memref<99xf32, #tpu.memory_space<smem>>
    %c78_49 = arith.constant 78 : index
    %187 = memref.load %arg2[%c78_49] : memref<99xf32, #tpu.memory_space<smem>>
    %188 = vector.extract_strided_slice %185 {offsets = [0, 0, 0], sizes = [1, 2, 256], strides = [1, 1, 1]} : vector<2x2x256xf32> to vector<1x2x256xf32>
    %189 = vector.shape_cast %188 : vector<1x2x256xf32> to vector<2x256xf32>
    %190 = vector.broadcast %186 : f32 to vector<2x256xf32>
    %191 = arith.mulf %190, %189 : vector<2x256xf32>
    %192 = vector.extract_strided_slice %185 {offsets = [1, 0, 0], sizes = [1, 2, 256], strides = [1, 1, 1]} : vector<2x2x256xf32> to vector<1x2x256xf32>
    %193 = vector.shape_cast %192 : vector<1x2x256xf32> to vector<2x256xf32>
    %194 = vector.broadcast %187 : f32 to vector<2x256xf32>
    %195 = arith.mulf %194, %193 : vector<2x256xf32>
    %196 = arith.addf %183, %191 : vector<2x256xf32>
    %197 = arith.addf %184, %195 : vector<2x256xf32>
    %c0_50 = arith.constant 0 : index
    %c0_51 = arith.constant 0 : index
    %c158 = arith.constant 158 : index
    %198 = vector.load %arg4[%c0_50, %c0_51, %c158] : memref<2x2x512xf32, #tpu.memory_space<vmem>>, vector<2x2x256xf32>
    %c36 = arith.constant 36 : index
    %199 = memref.load %arg2[%c36] : memref<99xf32, #tpu.memory_space<smem>>
    %c85 = arith.constant 85 : index
    %200 = memref.load %arg2[%c85] : memref<99xf32, #tpu.memory_space<smem>>
    %201 = vector.extract_strided_slice %198 {offsets = [0, 0, 0], sizes = [1, 2, 256], strides = [1, 1, 1]} : vector<2x2x256xf32> to vector<1x2x256xf32>
    %202 = vector.shape_cast %201 : vector<1x2x256xf32> to vector<2x256xf32>
    %203 = vector.broadcast %199 : f32 to vector<2x256xf32>
    %204 = arith.mulf %203, %202 : vector<2x256xf32>
    %205 = vector.extract_strided_slice %198 {offsets = [1, 0, 0], sizes = [1, 2, 256], strides = [1, 1, 1]} : vector<2x2x256xf32> to vector<1x2x256xf32>
    %206 = vector.shape_cast %205 : vector<1x2x256xf32> to vector<2x256xf32>
    %207 = vector.broadcast %200 : f32 to vector<2x256xf32>
    %208 = arith.mulf %207, %206 : vector<2x256xf32>
    %209 = arith.addf %196, %204 : vector<2x256xf32>
    %210 = arith.addf %197, %208 : vector<2x256xf32>
    %c0_52 = arith.constant 0 : index
    %c0_53 = arith.constant 0 : index
    %c174 = arith.constant 174 : index
    %211 = vector.load %arg4[%c0_52, %c0_53, %c174] : memref<2x2x512xf32, #tpu.memory_space<vmem>>, vector<2x2x256xf32>
    %c43 = arith.constant 43 : index
    %212 = memref.load %arg2[%c43] : memref<99xf32, #tpu.memory_space<smem>>
    %c92 = arith.constant 92 : index
    %213 = memref.load %arg2[%c92] : memref<99xf32, #tpu.memory_space<smem>>
    %214 = vector.extract_strided_slice %211 {offsets = [0, 0, 0], sizes = [1, 2, 256], strides = [1, 1, 1]} : vector<2x2x256xf32> to vector<1x2x256xf32>
    %215 = vector.shape_cast %214 : vector<1x2x256xf32> to vector<2x256xf32>
    %216 = vector.broadcast %212 : f32 to vector<2x256xf32>
    %217 = arith.mulf %216, %215 : vector<2x256xf32>
    %218 = vector.extract_strided_slice %211 {offsets = [1, 0, 0], sizes = [1, 2, 256], strides = [1, 1, 1]} : vector<2x2x256xf32> to vector<1x2x256xf32>
    %219 = vector.shape_cast %218 : vector<1x2x256xf32> to vector<2x256xf32>
    %220 = vector.broadcast %213 : f32 to vector<2x256xf32>
    %221 = arith.mulf %220, %219 : vector<2x256xf32>
    %222 = arith.addf %209, %217 : vector<2x256xf32>
    %223 = arith.addf %210, %221 : vector<2x256xf32>
    %c-2_i32 = arith.constant -2 : i32
    %224 = vector.broadcast %c-2_i32 : i32 to vector<1x256xi32>
    %225 = arith.addi %31, %224 : vector<1x256xi32>
    %c0_i32_54 = arith.constant 0 : i32
    %226 = vector.broadcast %c0_i32_54 : i32 to vector<1x256xi32>
    %227 = arith.cmpi sge, %225, %226 : vector<1x256xi32>
    %c-2_i32_55 = arith.constant -2 : i32
    %228 = vector.broadcast %c-2_i32_55 : i32 to vector<1x256xi32>
    %229 = arith.addi %31, %228 : vector<1x256xi32>
    %c16_i32_56 = arith.constant 16 : i32
    %230 = vector.broadcast %c16_i32_56 : i32 to vector<1x256xi32>
    %231 = arith.cmpi slt, %229, %230 : vector<1x256xi32>
    %232 = arith.andi %227, %231 : vector<1x256xi1>
    %233 = arith.addf %222, %223 : vector<2x256xf32>
    %cst_57 = arith.constant 0.000000e+00 : f32
    %234 = vector.shape_cast %232 : vector<1x256xi1> to vector<1x256xi1>
    %235 = vector.broadcast %234 : vector<1x256xi1> to vector<2x256xi1>
    %236 = vector.broadcast %cst_57 : f32 to vector<2x256xf32>
    %237 = arith.select %235, %233, %236 : vector<2x256xi1>, vector<2x256xf32>
    %c0_58 = arith.constant 0 : index
    %c0_59 = arith.constant 0 : index
    %c79 = arith.constant 79 : index
    %238 = vector.load %arg4[%c0_58, %c0_59, %c79] : memref<2x2x512xf32, #tpu.memory_space<vmem>>, vector<2x2x256xf32>
    %c2 = arith.constant 2 : index
    %239 = memref.load %arg2[%c2] : memref<99xf32, #tpu.memory_space<smem>>
    %c51 = arith.constant 51 : index
    %240 = memref.load %arg2[%c51] : memref<99xf32, #tpu.memory_space<smem>>
    %241 = vector.extract_strided_slice %238 {offsets = [0, 0, 0], sizes = [1, 2, 256], strides = [1, 1, 1]} : vector<2x2x256xf32> to vector<1x2x256xf32>
    %242 = vector.shape_cast %241 : vector<1x2x256xf32> to vector<2x256xf32>
    %243 = vector.broadcast %239 : f32 to vector<2x256xf32>
    %244 = arith.mulf %243, %242 : vector<2x256xf32>
    %245 = vector.extract_strided_slice %238 {offsets = [1, 0, 0], sizes = [1, 2, 256], strides = [1, 1, 1]} : vector<2x2x256xf32> to vector<1x2x256xf32>
    %246 = vector.shape_cast %245 : vector<1x2x256xf32> to vector<2x256xf32>
    %247 = vector.broadcast %240 : f32 to vector<2x256xf32>
    %248 = arith.mulf %247, %246 : vector<2x256xf32>
    %c0_60 = arith.constant 0 : index
    %c0_61 = arith.constant 0 : index
    %c95 = arith.constant 95 : index
    %249 = vector.load %arg4[%c0_60, %c0_61, %c95] : memref<2x2x512xf32, #tpu.memory_space<vmem>>, vector<2x2x256xf32>
    %c9 = arith.constant 9 : index
    %250 = memref.load %arg2[%c9] : memref<99xf32, #tpu.memory_space<smem>>
    %c58 = arith.constant 58 : index
    %251 = memref.load %arg2[%c58] : memref<99xf32, #tpu.memory_space<smem>>
    %252 = vector.extract_strided_slice %249 {offsets = [0, 0, 0], sizes = [1, 2, 256], strides = [1, 1, 1]} : vector<2x2x256xf32> to vector<1x2x256xf32>
    %253 = vector.shape_cast %252 : vector<1x2x256xf32> to vector<2x256xf32>
    %254 = vector.broadcast %250 : f32 to vector<2x256xf32>
    %255 = arith.mulf %254, %253 : vector<2x256xf32>
    %256 = vector.extract_strided_slice %249 {offsets = [1, 0, 0], sizes = [1, 2, 256], strides = [1, 1, 1]} : vector<2x2x256xf32> to vector<1x2x256xf32>
    %257 = vector.shape_cast %256 : vector<1x2x256xf32> to vector<2x256xf32>
    %258 = vector.broadcast %251 : f32 to vector<2x256xf32>
    %259 = arith.mulf %258, %257 : vector<2x256xf32>
    %260 = arith.addf %244, %255 : vector<2x256xf32>
    %261 = arith.addf %248, %259 : vector<2x256xf32>
    %c0_62 = arith.constant 0 : index
    %c0_63 = arith.constant 0 : index
    %c111 = arith.constant 111 : index
    %262 = vector.load %arg4[%c0_62, %c0_63, %c111] : memref<2x2x512xf32, #tpu.memory_space<vmem>>, vector<2x2x256xf32>
    %c16 = arith.constant 16 : index
    %263 = memref.load %arg2[%c16] : memref<99xf32, #tpu.memory_space<smem>>
    %c65 = arith.constant 65 : index
    %264 = memref.load %arg2[%c65] : memref<99xf32, #tpu.memory_space<smem>>
    %265 = vector.extract_strided_slice %262 {offsets = [0, 0, 0], sizes = [1, 2, 256], strides = [1, 1, 1]} : vector<2x2x256xf32> to vector<1x2x256xf32>
    %266 = vector.shape_cast %265 : vector<1x2x256xf32> to vector<2x256xf32>
    %267 = vector.broadcast %263 : f32 to vector<2x256xf32>
    %268 = arith.mulf %267, %266 : vector<2x256xf32>
    %269 = vector.extract_strided_slice %262 {offsets = [1, 0, 0], sizes = [1, 2, 256], strides = [1, 1, 1]} : vector<2x2x256xf32> to vector<1x2x256xf32>
    %270 = vector.shape_cast %269 : vector<1x2x256xf32> to vector<2x256xf32>
    %271 = vector.broadcast %264 : f32 to vector<2x256xf32>
    %272 = arith.mulf %271, %270 : vector<2x256xf32>
    %273 = arith.addf %260, %268 : vector<2x256xf32>
    %274 = arith.addf %261, %272 : vector<2x256xf32>
    %c0_64 = arith.constant 0 : index
    %c0_65 = arith.constant 0 : index
    %c127 = arith.constant 127 : index
    %275 = vector.load %arg4[%c0_64, %c0_65, %c127] : memref<2x2x512xf32, #tpu.memory_space<vmem>>, vector<2x2x256xf32>
    %c23 = arith.constant 23 : index
    %276 = memref.load %arg2[%c23] : memref<99xf32, #tpu.memory_space<smem>>
    %c72 = arith.constant 72 : index
    %277 = memref.load %arg2[%c72] : memref<99xf32, #tpu.memory_space<smem>>
    %278 = vector.extract_strided_slice %275 {offsets = [0, 0, 0], sizes = [1, 2, 256], strides = [1, 1, 1]} : vector<2x2x256xf32> to vector<1x2x256xf32>
    %279 = vector.shape_cast %278 : vector<1x2x256xf32> to vector<2x256xf32>
    %280 = vector.broadcast %276 : f32 to vector<2x256xf32>
    %281 = arith.mulf %280, %279 : vector<2x256xf32>
    %282 = vector.extract_strided_slice %275 {offsets = [1, 0, 0], sizes = [1, 2, 256], strides = [1, 1, 1]} : vector<2x2x256xf32> to vector<1x2x256xf32>
    %283 = vector.shape_cast %282 : vector<1x2x256xf32> to vector<2x256xf32>
    %284 = vector.broadcast %277 : f32 to vector<2x256xf32>
    %285 = arith.mulf %284, %283 : vector<2x256xf32>
    %286 = arith.addf %273, %281 : vector<2x256xf32>
    %287 = arith.addf %274, %285 : vector<2x256xf32>
    %c0_66 = arith.constant 0 : index
    %c0_67 = arith.constant 0 : index
    %c143 = arith.constant 143 : index
    %288 = vector.load %arg4[%c0_66, %c0_67, %c143] : memref<2x2x512xf32, #tpu.memory_space<vmem>>, vector<2x2x256xf32>
    %c30 = arith.constant 30 : index
    %289 = memref.load %arg2[%c30] : memref<99xf32, #tpu.memory_space<smem>>
    %c79_68 = arith.constant 79 : index
    %290 = memref.load %arg2[%c79_68] : memref<99xf32, #tpu.memory_space<smem>>
    %291 = vector.extract_strided_slice %288 {offsets = [0, 0, 0], sizes = [1, 2, 256], strides = [1, 1, 1]} : vector<2x2x256xf32> to vector<1x2x256xf32>
    %292 = vector.shape_cast %291 : vector<1x2x256xf32> to vector<2x256xf32>
    %293 = vector.broadcast %289 : f32 to vector<2x256xf32>
    %294 = arith.mulf %293, %292 : vector<2x256xf32>
    %295 = vector.extract_strided_slice %288 {offsets = [1, 0, 0], sizes = [1, 2, 256], strides = [1, 1, 1]} : vector<2x2x256xf32> to vector<1x2x256xf32>
    %296 = vector.shape_cast %295 : vector<1x2x256xf32> to vector<2x256xf32>
    %297 = vector.broadcast %290 : f32 to vector<2x256xf32>
    %298 = arith.mulf %297, %296 : vector<2x256xf32>
    %299 = arith.addf %286, %294 : vector<2x256xf32>
    %300 = arith.addf %287, %298 : vector<2x256xf32>
    %c0_69 = arith.constant 0 : index
    %c0_70 = arith.constant 0 : index
    %c159 = arith.constant 159 : index
    %301 = vector.load %arg4[%c0_69, %c0_70, %c159] : memref<2x2x512xf32, #tpu.memory_space<vmem>>, vector<2x2x256xf32>
    %c37 = arith.constant 37 : index
    %302 = memref.load %arg2[%c37] : memref<99xf32, #tpu.memory_space<smem>>
    %c86 = arith.constant 86 : index
    %303 = memref.load %arg2[%c86] : memref<99xf32, #tpu.memory_space<smem>>
    %304 = vector.extract_strided_slice %301 {offsets = [0, 0, 0], sizes = [1, 2, 256], strides = [1, 1, 1]} : vector<2x2x256xf32> to vector<1x2x256xf32>
    %305 = vector.shape_cast %304 : vector<1x2x256xf32> to vector<2x256xf32>
    %306 = vector.broadcast %302 : f32 to vector<2x256xf32>
    %307 = arith.mulf %306, %305 : vector<2x256xf32>
    %308 = vector.extract_strided_slice %301 {offsets = [1, 0, 0], sizes = [1, 2, 256], strides = [1, 1, 1]} : vector<2x2x256xf32> to vector<1x2x256xf32>
    %309 = vector.shape_cast %308 : vector<1x2x256xf32> to vector<2x256xf32>
    %310 = vector.broadcast %303 : f32 to vector<2x256xf32>
    %311 = arith.mulf %310, %309 : vector<2x256xf32>
    %312 = arith.addf %299, %307 : vector<2x256xf32>
    %313 = arith.addf %300, %311 : vector<2x256xf32>
    %c0_71 = arith.constant 0 : index
    %c0_72 = arith.constant 0 : index
    %c175 = arith.constant 175 : index
    %314 = vector.load %arg4[%c0_71, %c0_72, %c175] : memref<2x2x512xf32, #tpu.memory_space<vmem>>, vector<2x2x256xf32>
    %c44 = arith.constant 44 : index
    %315 = memref.load %arg2[%c44] : memref<99xf32, #tpu.memory_space<smem>>
    %c93_73 = arith.constant 93 : index
    %316 = memref.load %arg2[%c93_73] : memref<99xf32, #tpu.memory_space<smem>>
    %317 = vector.extract_strided_slice %314 {offsets = [0, 0, 0], sizes = [1, 2, 256], strides = [1, 1, 1]} : vector<2x2x256xf32> to vector<1x2x256xf32>
    %318 = vector.shape_cast %317 : vector<1x2x256xf32> to vector<2x256xf32>
    %319 = vector.broadcast %315 : f32 to vector<2x256xf32>
    %320 = arith.mulf %319, %318 : vector<2x256xf32>
    %321 = vector.extract_strided_slice %314 {offsets = [1, 0, 0], sizes = [1, 2, 256], strides = [1, 1, 1]} : vector<2x2x256xf32> to vector<1x2x256xf32>
    %322 = vector.shape_cast %321 : vector<1x2x256xf32> to vector<2x256xf32>
    %323 = vector.broadcast %316 : f32 to vector<2x256xf32>
    %324 = arith.mulf %323, %322 : vector<2x256xf32>
    %325 = arith.addf %312, %320 : vector<2x256xf32>
    %326 = arith.addf %313, %324 : vector<2x256xf32>
    %c-1_i32 = arith.constant -1 : i32
    %327 = vector.broadcast %c-1_i32 : i32 to vector<1x256xi32>
    %328 = arith.addi %31, %327 : vector<1x256xi32>
    %c0_i32_74 = arith.constant 0 : i32
    %329 = vector.broadcast %c0_i32_74 : i32 to vector<1x256xi32>
    %330 = arith.cmpi sge, %328, %329 : vector<1x256xi32>
    %c-1_i32_75 = arith.constant -1 : i32
    %331 = vector.broadcast %c-1_i32_75 : i32 to vector<1x256xi32>
    %332 = arith.addi %31, %331 : vector<1x256xi32>
    %c16_i32_76 = arith.constant 16 : i32
    %333 = vector.broadcast %c16_i32_76 : i32 to vector<1x256xi32>
    %334 = arith.cmpi slt, %332, %333 : vector<1x256xi32>
    %335 = arith.andi %330, %334 : vector<1x256xi1>
    %336 = arith.addf %325, %326 : vector<2x256xf32>
    %cst_77 = arith.constant 0.000000e+00 : f32
    %337 = vector.shape_cast %335 : vector<1x256xi1> to vector<1x256xi1>
    %338 = vector.broadcast %337 : vector<1x256xi1> to vector<2x256xi1>
    %339 = vector.broadcast %cst_77 : f32 to vector<2x256xf32>
    %340 = arith.select %338, %336, %339 : vector<2x256xi1>, vector<2x256xf32>
    %c0_78 = arith.constant 0 : index
    %c0_79 = arith.constant 0 : index
    %c80 = arith.constant 80 : index
    %341 = vector.load %arg4[%c0_78, %c0_79, %c80] : memref<2x2x512xf32, #tpu.memory_space<vmem>>, vector<2x2x256xf32>
    %c3 = arith.constant 3 : index
    %342 = memref.load %arg2[%c3] : memref<99xf32, #tpu.memory_space<smem>>
    %c52 = arith.constant 52 : index
    %343 = memref.load %arg2[%c52] : memref<99xf32, #tpu.memory_space<smem>>
    %344 = vector.extract_strided_slice %341 {offsets = [0, 0, 0], sizes = [1, 2, 256], strides = [1, 1, 1]} : vector<2x2x256xf32> to vector<1x2x256xf32>
    %345 = vector.shape_cast %344 : vector<1x2x256xf32> to vector<2x256xf32>
    %346 = vector.broadcast %342 : f32 to vector<2x256xf32>
    %347 = arith.mulf %346, %345 : vector<2x256xf32>
    %348 = vector.extract_strided_slice %341 {offsets = [1, 0, 0], sizes = [1, 2, 256], strides = [1, 1, 1]} : vector<2x2x256xf32> to vector<1x2x256xf32>
    %349 = vector.shape_cast %348 : vector<1x2x256xf32> to vector<2x256xf32>
    %350 = vector.broadcast %343 : f32 to vector<2x256xf32>
    %351 = arith.mulf %350, %349 : vector<2x256xf32>
    %c0_80 = arith.constant 0 : index
    %c0_81 = arith.constant 0 : index
    %c96 = arith.constant 96 : index
    %352 = vector.load %arg4[%c0_80, %c0_81, %c96] : memref<2x2x512xf32, #tpu.memory_space<vmem>>, vector<2x2x256xf32>
    %c10 = arith.constant 10 : index
    %353 = memref.load %arg2[%c10] : memref<99xf32, #tpu.memory_space<smem>>
    %c59 = arith.constant 59 : index
    %354 = memref.load %arg2[%c59] : memref<99xf32, #tpu.memory_space<smem>>
    %355 = vector.extract_strided_slice %352 {offsets = [0, 0, 0], sizes = [1, 2, 256], strides = [1, 1, 1]} : vector<2x2x256xf32> to vector<1x2x256xf32>
    %356 = vector.shape_cast %355 : vector<1x2x256xf32> to vector<2x256xf32>
    %357 = vector.broadcast %353 : f32 to vector<2x256xf32>
    %358 = arith.mulf %357, %356 : vector<2x256xf32>
    %359 = vector.extract_strided_slice %352 {offsets = [1, 0, 0], sizes = [1, 2, 256], strides = [1, 1, 1]} : vector<2x2x256xf32> to vector<1x2x256xf32>
    %360 = vector.shape_cast %359 : vector<1x2x256xf32> to vector<2x256xf32>
    %361 = vector.broadcast %354 : f32 to vector<2x256xf32>
    %362 = arith.mulf %361, %360 : vector<2x256xf32>
    %363 = arith.addf %347, %358 : vector<2x256xf32>
    %364 = arith.addf %351, %362 : vector<2x256xf32>
    %c0_82 = arith.constant 0 : index
    %c0_83 = arith.constant 0 : index
    %c112 = arith.constant 112 : index
    %365 = vector.load %arg4[%c0_82, %c0_83, %c112] : memref<2x2x512xf32, #tpu.memory_space<vmem>>, vector<2x2x256xf32>
    %c17 = arith.constant 17 : index
    %366 = memref.load %arg2[%c17] : memref<99xf32, #tpu.memory_space<smem>>
    %c66 = arith.constant 66 : index
    %367 = memref.load %arg2[%c66] : memref<99xf32, #tpu.memory_space<smem>>
    %368 = vector.extract_strided_slice %365 {offsets = [0, 0, 0], sizes = [1, 2, 256], strides = [1, 1, 1]} : vector<2x2x256xf32> to vector<1x2x256xf32>
    %369 = vector.shape_cast %368 : vector<1x2x256xf32> to vector<2x256xf32>
    %370 = vector.broadcast %366 : f32 to vector<2x256xf32>
    %371 = arith.mulf %370, %369 : vector<2x256xf32>
    %372 = vector.extract_strided_slice %365 {offsets = [1, 0, 0], sizes = [1, 2, 256], strides = [1, 1, 1]} : vector<2x2x256xf32> to vector<1x2x256xf32>
    %373 = vector.shape_cast %372 : vector<1x2x256xf32> to vector<2x256xf32>
    %374 = vector.broadcast %367 : f32 to vector<2x256xf32>
    %375 = arith.mulf %374, %373 : vector<2x256xf32>
    %376 = arith.addf %363, %371 : vector<2x256xf32>
    %377 = arith.addf %364, %375 : vector<2x256xf32>
    %c0_84 = arith.constant 0 : index
    %c0_85 = arith.constant 0 : index
    %c128_86 = arith.constant 128 : index
    %378 = vector.load %arg4[%c0_84, %c0_85, %c128_86] : memref<2x2x512xf32, #tpu.memory_space<vmem>>, vector<2x2x256xf32>
    %c24 = arith.constant 24 : index
    %379 = memref.load %arg2[%c24] : memref<99xf32, #tpu.memory_space<smem>>
    %c73 = arith.constant 73 : index
    %380 = memref.load %arg2[%c73] : memref<99xf32, #tpu.memory_space<smem>>
    %381 = vector.extract_strided_slice %378 {offsets = [0, 0, 0], sizes = [1, 2, 256], strides = [1, 1, 1]} : vector<2x2x256xf32> to vector<1x2x256xf32>
    %382 = vector.shape_cast %381 : vector<1x2x256xf32> to vector<2x256xf32>
    %383 = vector.broadcast %379 : f32 to vector<2x256xf32>
    %384 = arith.mulf %383, %382 : vector<2x256xf32>
    %385 = vector.extract_strided_slice %378 {offsets = [1, 0, 0], sizes = [1, 2, 256], strides = [1, 1, 1]} : vector<2x2x256xf32> to vector<1x2x256xf32>
    %386 = vector.shape_cast %385 : vector<1x2x256xf32> to vector<2x256xf32>
    %387 = vector.broadcast %380 : f32 to vector<2x256xf32>
    %388 = arith.mulf %387, %386 : vector<2x256xf32>
    %389 = arith.addf %376, %384 : vector<2x256xf32>
    %390 = arith.addf %377, %388 : vector<2x256xf32>
    %c0_87 = arith.constant 0 : index
    %c0_88 = arith.constant 0 : index
    %c144 = arith.constant 144 : index
    %391 = vector.load %arg4[%c0_87, %c0_88, %c144] : memref<2x2x512xf32, #tpu.memory_space<vmem>>, vector<2x2x256xf32>
    %c31 = arith.constant 31 : index
    %392 = memref.load %arg2[%c31] : memref<99xf32, #tpu.memory_space<smem>>
    %c80_89 = arith.constant 80 : index
    %393 = memref.load %arg2[%c80_89] : memref<99xf32, #tpu.memory_space<smem>>
    %394 = vector.extract_strided_slice %391 {offsets = [0, 0, 0], sizes = [1, 2, 256], strides = [1, 1, 1]} : vector<2x2x256xf32> to vector<1x2x256xf32>
    %395 = vector.shape_cast %394 : vector<1x2x256xf32> to vector<2x256xf32>
    %396 = vector.broadcast %392 : f32 to vector<2x256xf32>
    %397 = arith.mulf %396, %395 : vector<2x256xf32>
    %398 = vector.extract_strided_slice %391 {offsets = [1, 0, 0], sizes = [1, 2, 256], strides = [1, 1, 1]} : vector<2x2x256xf32> to vector<1x2x256xf32>
    %399 = vector.shape_cast %398 : vector<1x2x256xf32> to vector<2x256xf32>
    %400 = vector.broadcast %393 : f32 to vector<2x256xf32>
    %401 = arith.mulf %400, %399 : vector<2x256xf32>
    %402 = arith.addf %389, %397 : vector<2x256xf32>
    %403 = arith.addf %390, %401 : vector<2x256xf32>
    %c0_90 = arith.constant 0 : index
    %c0_91 = arith.constant 0 : index
    %c160 = arith.constant 160 : index
    %404 = vector.load %arg4[%c0_90, %c0_91, %c160] : memref<2x2x512xf32, #tpu.memory_space<vmem>>, vector<2x2x256xf32>
    %c38 = arith.constant 38 : index
    %405 = memref.load %arg2[%c38] : memref<99xf32, #tpu.memory_space<smem>>
    %c87 = arith.constant 87 : index
    %406 = memref.load %arg2[%c87] : memref<99xf32, #tpu.memory_space<smem>>
    %407 = vector.extract_strided_slice %404 {offsets = [0, 0, 0], sizes = [1, 2, 256], strides = [1, 1, 1]} : vector<2x2x256xf32> to vector<1x2x256xf32>
    %408 = vector.shape_cast %407 : vector<1x2x256xf32> to vector<2x256xf32>
    %409 = vector.broadcast %405 : f32 to vector<2x256xf32>
    %410 = arith.mulf %409, %408 : vector<2x256xf32>
    %411 = vector.extract_strided_slice %404 {offsets = [1, 0, 0], sizes = [1, 2, 256], strides = [1, 1, 1]} : vector<2x2x256xf32> to vector<1x2x256xf32>
    %412 = vector.shape_cast %411 : vector<1x2x256xf32> to vector<2x256xf32>
    %413 = vector.broadcast %406 : f32 to vector<2x256xf32>
    %414 = arith.mulf %413, %412 : vector<2x256xf32>
    %415 = arith.addf %402, %410 : vector<2x256xf32>
    %416 = arith.addf %403, %414 : vector<2x256xf32>
    %c0_92 = arith.constant 0 : index
    %c0_93 = arith.constant 0 : index
    %c176 = arith.constant 176 : index
    %417 = vector.load %arg4[%c0_92, %c0_93, %c176] : memref<2x2x512xf32, #tpu.memory_space<vmem>>, vector<2x2x256xf32>
    %c45 = arith.constant 45 : index
    %418 = memref.load %arg2[%c45] : memref<99xf32, #tpu.memory_space<smem>>
    %c94_94 = arith.constant 94 : index
    %419 = memref.load %arg2[%c94_94] : memref<99xf32, #tpu.memory_space<smem>>
    %420 = vector.extract_strided_slice %417 {offsets = [0, 0, 0], sizes = [1, 2, 256], strides = [1, 1, 1]} : vector<2x2x256xf32> to vector<1x2x256xf32>
    %421 = vector.shape_cast %420 : vector<1x2x256xf32> to vector<2x256xf32>
    %422 = vector.broadcast %418 : f32 to vector<2x256xf32>
    %423 = arith.mulf %422, %421 : vector<2x256xf32>
    %424 = vector.extract_strided_slice %417 {offsets = [1, 0, 0], sizes = [1, 2, 256], strides = [1, 1, 1]} : vector<2x2x256xf32> to vector<1x2x256xf32>
    %425 = vector.shape_cast %424 : vector<1x2x256xf32> to vector<2x256xf32>
    %426 = vector.broadcast %419 : f32 to vector<2x256xf32>
    %427 = arith.mulf %426, %425 : vector<2x256xf32>
    %428 = arith.addf %415, %423 : vector<2x256xf32>
    %429 = arith.addf %416, %427 : vector<2x256xf32>
    %c0_i32_95 = arith.constant 0 : i32
    %430 = vector.broadcast %c0_i32_95 : i32 to vector<1x256xi32>
    %431 = arith.addi %31, %430 : vector<1x256xi32>
    %c0_i32_96 = arith.constant 0 : i32
    %432 = vector.broadcast %c0_i32_96 : i32 to vector<1x256xi32>
    %433 = arith.cmpi sge, %431, %432 : vector<1x256xi32>
    %c0_i32_97 = arith.constant 0 : i32
    %434 = vector.broadcast %c0_i32_97 : i32 to vector<1x256xi32>
    %435 = arith.addi %31, %434 : vector<1x256xi32>
    %c16_i32_98 = arith.constant 16 : i32
    %436 = vector.broadcast %c16_i32_98 : i32 to vector<1x256xi32>
    %437 = arith.cmpi slt, %435, %436 : vector<1x256xi32>
    %438 = arith.andi %433, %437 : vector<1x256xi1>
    %439 = arith.addf %428, %429 : vector<2x256xf32>
    %cst_99 = arith.constant 0.000000e+00 : f32
    %440 = vector.shape_cast %438 : vector<1x256xi1> to vector<1x256xi1>
    %441 = vector.broadcast %440 : vector<1x256xi1> to vector<2x256xi1>
    %442 = vector.broadcast %cst_99 : f32 to vector<2x256xf32>
    %443 = arith.select %441, %439, %442 : vector<2x256xi1>, vector<2x256xf32>
    %c0_100 = arith.constant 0 : index
    %c0_101 = arith.constant 0 : index
    %c81 = arith.constant 81 : index
    %444 = vector.load %arg4[%c0_100, %c0_101, %c81] : memref<2x2x512xf32, #tpu.memory_space<vmem>>, vector<2x2x256xf32>
    %c4 = arith.constant 4 : index
    %445 = memref.load %arg2[%c4] : memref<99xf32, #tpu.memory_space<smem>>
    %c53 = arith.constant 53 : index
    %446 = memref.load %arg2[%c53] : memref<99xf32, #tpu.memory_space<smem>>
    %447 = vector.extract_strided_slice %444 {offsets = [0, 0, 0], sizes = [1, 2, 256], strides = [1, 1, 1]} : vector<2x2x256xf32> to vector<1x2x256xf32>
    %448 = vector.shape_cast %447 : vector<1x2x256xf32> to vector<2x256xf32>
    %449 = vector.broadcast %445 : f32 to vector<2x256xf32>
    %450 = arith.mulf %449, %448 : vector<2x256xf32>
    %451 = vector.extract_strided_slice %444 {offsets = [1, 0, 0], sizes = [1, 2, 256], strides = [1, 1, 1]} : vector<2x2x256xf32> to vector<1x2x256xf32>
    %452 = vector.shape_cast %451 : vector<1x2x256xf32> to vector<2x256xf32>
    %453 = vector.broadcast %446 : f32 to vector<2x256xf32>
    %454 = arith.mulf %453, %452 : vector<2x256xf32>
    %c0_102 = arith.constant 0 : index
    %c0_103 = arith.constant 0 : index
    %c97 = arith.constant 97 : index
    %455 = vector.load %arg4[%c0_102, %c0_103, %c97] : memref<2x2x512xf32, #tpu.memory_space<vmem>>, vector<2x2x256xf32>
    %c11 = arith.constant 11 : index
    %456 = memref.load %arg2[%c11] : memref<99xf32, #tpu.memory_space<smem>>
    %c60 = arith.constant 60 : index
    %457 = memref.load %arg2[%c60] : memref<99xf32, #tpu.memory_space<smem>>
    %458 = vector.extract_strided_slice %455 {offsets = [0, 0, 0], sizes = [1, 2, 256], strides = [1, 1, 1]} : vector<2x2x256xf32> to vector<1x2x256xf32>
    %459 = vector.shape_cast %458 : vector<1x2x256xf32> to vector<2x256xf32>
    %460 = vector.broadcast %456 : f32 to vector<2x256xf32>
    %461 = arith.mulf %460, %459 : vector<2x256xf32>
    %462 = vector.extract_strided_slice %455 {offsets = [1, 0, 0], sizes = [1, 2, 256], strides = [1, 1, 1]} : vector<2x2x256xf32> to vector<1x2x256xf32>
    %463 = vector.shape_cast %462 : vector<1x2x256xf32> to vector<2x256xf32>
    %464 = vector.broadcast %457 : f32 to vector<2x256xf32>
    %465 = arith.mulf %464, %463 : vector<2x256xf32>
    %466 = arith.addf %450, %461 : vector<2x256xf32>
    %467 = arith.addf %454, %465 : vector<2x256xf32>
    %c0_104 = arith.constant 0 : index
    %c0_105 = arith.constant 0 : index
    %c113 = arith.constant 113 : index
    %468 = vector.load %arg4[%c0_104, %c0_105, %c113] : memref<2x2x512xf32, #tpu.memory_space<vmem>>, vector<2x2x256xf32>
    %c18 = arith.constant 18 : index
    %469 = memref.load %arg2[%c18] : memref<99xf32, #tpu.memory_space<smem>>
    %c67 = arith.constant 67 : index
    %470 = memref.load %arg2[%c67] : memref<99xf32, #tpu.memory_space<smem>>
    %471 = vector.extract_strided_slice %468 {offsets = [0, 0, 0], sizes = [1, 2, 256], strides = [1, 1, 1]} : vector<2x2x256xf32> to vector<1x2x256xf32>
    %472 = vector.shape_cast %471 : vector<1x2x256xf32> to vector<2x256xf32>
    %473 = vector.broadcast %469 : f32 to vector<2x256xf32>
    %474 = arith.mulf %473, %472 : vector<2x256xf32>
    %475 = vector.extract_strided_slice %468 {offsets = [1, 0, 0], sizes = [1, 2, 256], strides = [1, 1, 1]} : vector<2x2x256xf32> to vector<1x2x256xf32>
    %476 = vector.shape_cast %475 : vector<1x2x256xf32> to vector<2x256xf32>
    %477 = vector.broadcast %470 : f32 to vector<2x256xf32>
    %478 = arith.mulf %477, %476 : vector<2x256xf32>
    %479 = arith.addf %466, %474 : vector<2x256xf32>
    %480 = arith.addf %467, %478 : vector<2x256xf32>
    %c0_106 = arith.constant 0 : index
    %c0_107 = arith.constant 0 : index
    %c129 = arith.constant 129 : index
    %481 = vector.load %arg4[%c0_106, %c0_107, %c129] : memref<2x2x512xf32, #tpu.memory_space<vmem>>, vector<2x2x256xf32>
    %c25 = arith.constant 25 : index
    %482 = memref.load %arg2[%c25] : memref<99xf32, #tpu.memory_space<smem>>
    %c74 = arith.constant 74 : index
    %483 = memref.load %arg2[%c74] : memref<99xf32, #tpu.memory_space<smem>>
    %484 = vector.extract_strided_slice %481 {offsets = [0, 0, 0], sizes = [1, 2, 256], strides = [1, 1, 1]} : vector<2x2x256xf32> to vector<1x2x256xf32>
    %485 = vector.shape_cast %484 : vector<1x2x256xf32> to vector<2x256xf32>
    %486 = vector.broadcast %482 : f32 to vector<2x256xf32>
    %487 = arith.mulf %486, %485 : vector<2x256xf32>
    %488 = vector.extract_strided_slice %481 {offsets = [1, 0, 0], sizes = [1, 2, 256], strides = [1, 1, 1]} : vector<2x2x256xf32> to vector<1x2x256xf32>
    %489 = vector.shape_cast %488 : vector<1x2x256xf32> to vector<2x256xf32>
    %490 = vector.broadcast %483 : f32 to vector<2x256xf32>
    %491 = arith.mulf %490, %489 : vector<2x256xf32>
    %492 = arith.addf %479, %487 : vector<2x256xf32>
    %493 = arith.addf %480, %491 : vector<2x256xf32>
    %c0_108 = arith.constant 0 : index
    %c0_109 = arith.constant 0 : index
    %c145 = arith.constant 145 : index
    %494 = vector.load %arg4[%c0_108, %c0_109, %c145] : memref<2x2x512xf32, #tpu.memory_space<vmem>>, vector<2x2x256xf32>
    %c32 = arith.constant 32 : index
    %495 = memref.load %arg2[%c32] : memref<99xf32, #tpu.memory_space<smem>>
    %c81_110 = arith.constant 81 : index
    %496 = memref.load %arg2[%c81_110] : memref<99xf32, #tpu.memory_space<smem>>
    %497 = vector.extract_strided_slice %494 {offsets = [0, 0, 0], sizes = [1, 2, 256], strides = [1, 1, 1]} : vector<2x2x256xf32> to vector<1x2x256xf32>
    %498 = vector.shape_cast %497 : vector<1x2x256xf32> to vector<2x256xf32>
    %499 = vector.broadcast %495 : f32 to vector<2x256xf32>
    %500 = arith.mulf %499, %498 : vector<2x256xf32>
    %501 = vector.extract_strided_slice %494 {offsets = [1, 0, 0], sizes = [1, 2, 256], strides = [1, 1, 1]} : vector<2x2x256xf32> to vector<1x2x256xf32>
    %502 = vector.shape_cast %501 : vector<1x2x256xf32> to vector<2x256xf32>
    %503 = vector.broadcast %496 : f32 to vector<2x256xf32>
    %504 = arith.mulf %503, %502 : vector<2x256xf32>
    %505 = arith.addf %492, %500 : vector<2x256xf32>
    %506 = arith.addf %493, %504 : vector<2x256xf32>
    %c0_111 = arith.constant 0 : index
    %c0_112 = arith.constant 0 : index
    %c161 = arith.constant 161 : index
    %507 = vector.load %arg4[%c0_111, %c0_112, %c161] : memref<2x2x512xf32, #tpu.memory_space<vmem>>, vector<2x2x256xf32>
    %c39 = arith.constant 39 : index
    %508 = memref.load %arg2[%c39] : memref<99xf32, #tpu.memory_space<smem>>
    %c88 = arith.constant 88 : index
    %509 = memref.load %arg2[%c88] : memref<99xf32, #tpu.memory_space<smem>>
    %510 = vector.extract_strided_slice %507 {offsets = [0, 0, 0], sizes = [1, 2, 256], strides = [1, 1, 1]} : vector<2x2x256xf32> to vector<1x2x256xf32>
    %511 = vector.shape_cast %510 : vector<1x2x256xf32> to vector<2x256xf32>
    %512 = vector.broadcast %508 : f32 to vector<2x256xf32>
    %513 = arith.mulf %512, %511 : vector<2x256xf32>
    %514 = vector.extract_strided_slice %507 {offsets = [1, 0, 0], sizes = [1, 2, 256], strides = [1, 1, 1]} : vector<2x2x256xf32> to vector<1x2x256xf32>
    %515 = vector.shape_cast %514 : vector<1x2x256xf32> to vector<2x256xf32>
    %516 = vector.broadcast %509 : f32 to vector<2x256xf32>
    %517 = arith.mulf %516, %515 : vector<2x256xf32>
    %518 = arith.addf %505, %513 : vector<2x256xf32>
    %519 = arith.addf %506, %517 : vector<2x256xf32>
    %c0_113 = arith.constant 0 : index
    %c0_114 = arith.constant 0 : index
    %c177 = arith.constant 177 : index
    %520 = vector.load %arg4[%c0_113, %c0_114, %c177] : memref<2x2x512xf32, #tpu.memory_space<vmem>>, vector<2x2x256xf32>
    %c46 = arith.constant 46 : index
    %521 = memref.load %arg2[%c46] : memref<99xf32, #tpu.memory_space<smem>>
    %c95_115 = arith.constant 95 : index
    %522 = memref.load %arg2[%c95_115] : memref<99xf32, #tpu.memory_space<smem>>
    %523 = vector.extract_strided_slice %520 {offsets = [0, 0, 0], sizes = [1, 2, 256], strides = [1, 1, 1]} : vector<2x2x256xf32> to vector<1x2x256xf32>
    %524 = vector.shape_cast %523 : vector<1x2x256xf32> to vector<2x256xf32>
    %525 = vector.broadcast %521 : f32 to vector<2x256xf32>
    %526 = arith.mulf %525, %524 : vector<2x256xf32>
    %527 = vector.extract_strided_slice %520 {offsets = [1, 0, 0], sizes = [1, 2, 256], strides = [1, 1, 1]} : vector<2x2x256xf32> to vector<1x2x256xf32>
    %528 = vector.shape_cast %527 : vector<1x2x256xf32> to vector<2x256xf32>
    %529 = vector.broadcast %522 : f32 to vector<2x256xf32>
    %530 = arith.mulf %529, %528 : vector<2x256xf32>
    %531 = arith.addf %518, %526 : vector<2x256xf32>
    %532 = arith.addf %519, %530 : vector<2x256xf32>
    %c1_i32_116 = arith.constant 1 : i32
    %533 = vector.broadcast %c1_i32_116 : i32 to vector<1x256xi32>
    %534 = arith.addi %31, %533 : vector<1x256xi32>
    %c0_i32_117 = arith.constant 0 : i32
    %535 = vector.broadcast %c0_i32_117 : i32 to vector<1x256xi32>
    %536 = arith.cmpi sge, %534, %535 : vector<1x256xi32>
    %c1_i32_118 = arith.constant 1 : i32
    %537 = vector.broadcast %c1_i32_118 : i32 to vector<1x256xi32>
    %538 = arith.addi %31, %537 : vector<1x256xi32>
    %c16_i32_119 = arith.constant 16 : i32
    %539 = vector.broadcast %c16_i32_119 : i32 to vector<1x256xi32>
    %540 = arith.cmpi slt, %538, %539 : vector<1x256xi32>
    %541 = arith.andi %536, %540 : vector<1x256xi1>
    %542 = arith.addf %531, %532 : vector<2x256xf32>
    %cst_120 = arith.constant 0.000000e+00 : f32
    %543 = vector.shape_cast %541 : vector<1x256xi1> to vector<1x256xi1>
    %544 = vector.broadcast %543 : vector<1x256xi1> to vector<2x256xi1>
    %545 = vector.broadcast %cst_120 : f32 to vector<2x256xf32>
    %546 = arith.select %544, %542, %545 : vector<2x256xi1>, vector<2x256xf32>
    %c0_121 = arith.constant 0 : index
    %c0_122 = arith.constant 0 : index
    %c82 = arith.constant 82 : index
    %547 = vector.load %arg4[%c0_121, %c0_122, %c82] : memref<2x2x512xf32, #tpu.memory_space<vmem>>, vector<2x2x256xf32>
    %c5 = arith.constant 5 : index
    %548 = memref.load %arg2[%c5] : memref<99xf32, #tpu.memory_space<smem>>
    %c54 = arith.constant 54 : index
    %549 = memref.load %arg2[%c54] : memref<99xf32, #tpu.memory_space<smem>>
    %550 = vector.extract_strided_slice %547 {offsets = [0, 0, 0], sizes = [1, 2, 256], strides = [1, 1, 1]} : vector<2x2x256xf32> to vector<1x2x256xf32>
    %551 = vector.shape_cast %550 : vector<1x2x256xf32> to vector<2x256xf32>
    %552 = vector.broadcast %548 : f32 to vector<2x256xf32>
    %553 = arith.mulf %552, %551 : vector<2x256xf32>
    %554 = vector.extract_strided_slice %547 {offsets = [1, 0, 0], sizes = [1, 2, 256], strides = [1, 1, 1]} : vector<2x2x256xf32> to vector<1x2x256xf32>
    %555 = vector.shape_cast %554 : vector<1x2x256xf32> to vector<2x256xf32>
    %556 = vector.broadcast %549 : f32 to vector<2x256xf32>
    %557 = arith.mulf %556, %555 : vector<2x256xf32>
    %c0_123 = arith.constant 0 : index
    %c0_124 = arith.constant 0 : index
    %c98 = arith.constant 98 : index
    %558 = vector.load %arg4[%c0_123, %c0_124, %c98] : memref<2x2x512xf32, #tpu.memory_space<vmem>>, vector<2x2x256xf32>
    %c12 = arith.constant 12 : index
    %559 = memref.load %arg2[%c12] : memref<99xf32, #tpu.memory_space<smem>>
    %c61 = arith.constant 61 : index
    %560 = memref.load %arg2[%c61] : memref<99xf32, #tpu.memory_space<smem>>
    %561 = vector.extract_strided_slice %558 {offsets = [0, 0, 0], sizes = [1, 2, 256], strides = [1, 1, 1]} : vector<2x2x256xf32> to vector<1x2x256xf32>
    %562 = vector.shape_cast %561 : vector<1x2x256xf32> to vector<2x256xf32>
    %563 = vector.broadcast %559 : f32 to vector<2x256xf32>
    %564 = arith.mulf %563, %562 : vector<2x256xf32>
    %565 = vector.extract_strided_slice %558 {offsets = [1, 0, 0], sizes = [1, 2, 256], strides = [1, 1, 1]} : vector<2x2x256xf32> to vector<1x2x256xf32>
    %566 = vector.shape_cast %565 : vector<1x2x256xf32> to vector<2x256xf32>
    %567 = vector.broadcast %560 : f32 to vector<2x256xf32>
    %568 = arith.mulf %567, %566 : vector<2x256xf32>
    %569 = arith.addf %553, %564 : vector<2x256xf32>
    %570 = arith.addf %557, %568 : vector<2x256xf32>
    %c0_125 = arith.constant 0 : index
    %c0_126 = arith.constant 0 : index
    %c114 = arith.constant 114 : index
    %571 = vector.load %arg4[%c0_125, %c0_126, %c114] : memref<2x2x512xf32, #tpu.memory_space<vmem>>, vector<2x2x256xf32>
    %c19 = arith.constant 19 : index
    %572 = memref.load %arg2[%c19] : memref<99xf32, #tpu.memory_space<smem>>
    %c68 = arith.constant 68 : index
    %573 = memref.load %arg2[%c68] : memref<99xf32, #tpu.memory_space<smem>>
    %574 = vector.extract_strided_slice %571 {offsets = [0, 0, 0], sizes = [1, 2, 256], strides = [1, 1, 1]} : vector<2x2x256xf32> to vector<1x2x256xf32>
    %575 = vector.shape_cast %574 : vector<1x2x256xf32> to vector<2x256xf32>
    %576 = vector.broadcast %572 : f32 to vector<2x256xf32>
    %577 = arith.mulf %576, %575 : vector<2x256xf32>
    %578 = vector.extract_strided_slice %571 {offsets = [1, 0, 0], sizes = [1, 2, 256], strides = [1, 1, 1]} : vector<2x2x256xf32> to vector<1x2x256xf32>
    %579 = vector.shape_cast %578 : vector<1x2x256xf32> to vector<2x256xf32>
    %580 = vector.broadcast %573 : f32 to vector<2x256xf32>
    %581 = arith.mulf %580, %579 : vector<2x256xf32>
    %582 = arith.addf %569, %577 : vector<2x256xf32>
    %583 = arith.addf %570, %581 : vector<2x256xf32>
    %c0_127 = arith.constant 0 : index
    %c0_128 = arith.constant 0 : index
    %c130 = arith.constant 130 : index
    %584 = vector.load %arg4[%c0_127, %c0_128, %c130] : memref<2x2x512xf32, #tpu.memory_space<vmem>>, vector<2x2x256xf32>
    %c26 = arith.constant 26 : index
    %585 = memref.load %arg2[%c26] : memref<99xf32, #tpu.memory_space<smem>>
    %c75 = arith.constant 75 : index
    %586 = memref.load %arg2[%c75] : memref<99xf32, #tpu.memory_space<smem>>
    %587 = vector.extract_strided_slice %584 {offsets = [0, 0, 0], sizes = [1, 2, 256], strides = [1, 1, 1]} : vector<2x2x256xf32> to vector<1x2x256xf32>
    %588 = vector.shape_cast %587 : vector<1x2x256xf32> to vector<2x256xf32>
    %589 = vector.broadcast %585 : f32 to vector<2x256xf32>
    %590 = arith.mulf %589, %588 : vector<2x256xf32>
    %591 = vector.extract_strided_slice %584 {offsets = [1, 0, 0], sizes = [1, 2, 256], strides = [1, 1, 1]} : vector<2x2x256xf32> to vector<1x2x256xf32>
    %592 = vector.shape_cast %591 : vector<1x2x256xf32> to vector<2x256xf32>
    %593 = vector.broadcast %586 : f32 to vector<2x256xf32>
    %594 = arith.mulf %593, %592 : vector<2x256xf32>
    %595 = arith.addf %582, %590 : vector<2x256xf32>
    %596 = arith.addf %583, %594 : vector<2x256xf32>
    %c0_129 = arith.constant 0 : index
    %c0_130 = arith.constant 0 : index
    %c146 = arith.constant 146 : index
    %597 = vector.load %arg4[%c0_129, %c0_130, %c146] : memref<2x2x512xf32, #tpu.memory_space<vmem>>, vector<2x2x256xf32>
    %c33 = arith.constant 33 : index
    %598 = memref.load %arg2[%c33] : memref<99xf32, #tpu.memory_space<smem>>
    %c82_131 = arith.constant 82 : index
    %599 = memref.load %arg2[%c82_131] : memref<99xf32, #tpu.memory_space<smem>>
    %600 = vector.extract_strided_slice %597 {offsets = [0, 0, 0], sizes = [1, 2, 256], strides = [1, 1, 1]} : vector<2x2x256xf32> to vector<1x2x256xf32>
    %601 = vector.shape_cast %600 : vector<1x2x256xf32> to vector<2x256xf32>
    %602 = vector.broadcast %598 : f32 to vector<2x256xf32>
    %603 = arith.mulf %602, %601 : vector<2x256xf32>
    %604 = vector.extract_strided_slice %597 {offsets = [1, 0, 0], sizes = [1, 2, 256], strides = [1, 1, 1]} : vector<2x2x256xf32> to vector<1x2x256xf32>
    %605 = vector.shape_cast %604 : vector<1x2x256xf32> to vector<2x256xf32>
    %606 = vector.broadcast %599 : f32 to vector<2x256xf32>
    %607 = arith.mulf %606, %605 : vector<2x256xf32>
    %608 = arith.addf %595, %603 : vector<2x256xf32>
    %609 = arith.addf %596, %607 : vector<2x256xf32>
    %c0_132 = arith.constant 0 : index
    %c0_133 = arith.constant 0 : index
    %c162 = arith.constant 162 : index
    %610 = vector.load %arg4[%c0_132, %c0_133, %c162] : memref<2x2x512xf32, #tpu.memory_space<vmem>>, vector<2x2x256xf32>
    %c40 = arith.constant 40 : index
    %611 = memref.load %arg2[%c40] : memref<99xf32, #tpu.memory_space<smem>>
    %c89 = arith.constant 89 : index
    %612 = memref.load %arg2[%c89] : memref<99xf32, #tpu.memory_space<smem>>
    %613 = vector.extract_strided_slice %610 {offsets = [0, 0, 0], sizes = [1, 2, 256], strides = [1, 1, 1]} : vector<2x2x256xf32> to vector<1x2x256xf32>
    %614 = vector.shape_cast %613 : vector<1x2x256xf32> to vector<2x256xf32>
    %615 = vector.broadcast %611 : f32 to vector<2x256xf32>
    %616 = arith.mulf %615, %614 : vector<2x256xf32>
    %617 = vector.extract_strided_slice %610 {offsets = [1, 0, 0], sizes = [1, 2, 256], strides = [1, 1, 1]} : vector<2x2x256xf32> to vector<1x2x256xf32>
    %618 = vector.shape_cast %617 : vector<1x2x256xf32> to vector<2x256xf32>
    %619 = vector.broadcast %612 : f32 to vector<2x256xf32>
    %620 = arith.mulf %619, %618 : vector<2x256xf32>
    %621 = arith.addf %608, %616 : vector<2x256xf32>
    %622 = arith.addf %609, %620 : vector<2x256xf32>
    %c0_134 = arith.constant 0 : index
    %c0_135 = arith.constant 0 : index
    %c178 = arith.constant 178 : index
    %623 = vector.load %arg4[%c0_134, %c0_135, %c178] : memref<2x2x512xf32, #tpu.memory_space<vmem>>, vector<2x2x256xf32>
    %c47 = arith.constant 47 : index
    %624 = memref.load %arg2[%c47] : memref<99xf32, #tpu.memory_space<smem>>
    %c96_136 = arith.constant 96 : index
    %625 = memref.load %arg2[%c96_136] : memref<99xf32, #tpu.memory_space<smem>>
    %626 = vector.extract_strided_slice %623 {offsets = [0, 0, 0], sizes = [1, 2, 256], strides = [1, 1, 1]} : vector<2x2x256xf32> to vector<1x2x256xf32>
    %627 = vector.shape_cast %626 : vector<1x2x256xf32> to vector<2x256xf32>
    %628 = vector.broadcast %624 : f32 to vector<2x256xf32>
    %629 = arith.mulf %628, %627 : vector<2x256xf32>
    %630 = vector.extract_strided_slice %623 {offsets = [1, 0, 0], sizes = [1, 2, 256], strides = [1, 1, 1]} : vector<2x2x256xf32> to vector<1x2x256xf32>
    %631 = vector.shape_cast %630 : vector<1x2x256xf32> to vector<2x256xf32>
    %632 = vector.broadcast %625 : f32 to vector<2x256xf32>
    %633 = arith.mulf %632, %631 : vector<2x256xf32>
    %634 = arith.addf %621, %629 : vector<2x256xf32>
    %635 = arith.addf %622, %633 : vector<2x256xf32>
    %c2_i32 = arith.constant 2 : i32
    %636 = vector.broadcast %c2_i32 : i32 to vector<1x256xi32>
    %637 = arith.addi %31, %636 : vector<1x256xi32>
    %c0_i32_137 = arith.constant 0 : i32
    %638 = vector.broadcast %c0_i32_137 : i32 to vector<1x256xi32>
    %639 = arith.cmpi sge, %637, %638 : vector<1x256xi32>
    %c2_i32_138 = arith.constant 2 : i32
    %640 = vector.broadcast %c2_i32_138 : i32 to vector<1x256xi32>
    %641 = arith.addi %31, %640 : vector<1x256xi32>
    %c16_i32_139 = arith.constant 16 : i32
    %642 = vector.broadcast %c16_i32_139 : i32 to vector<1x256xi32>
    %643 = arith.cmpi slt, %641, %642 : vector<1x256xi32>
    %644 = arith.andi %639, %643 : vector<1x256xi1>
    %645 = arith.addf %634, %635 : vector<2x256xf32>
    %cst_140 = arith.constant 0.000000e+00 : f32
    %646 = vector.shape_cast %644 : vector<1x256xi1> to vector<1x256xi1>
    %647 = vector.broadcast %646 : vector<1x256xi1> to vector<2x256xi1>
    %648 = vector.broadcast %cst_140 : f32 to vector<2x256xf32>
    %649 = arith.select %647, %645, %648 : vector<2x256xi1>, vector<2x256xf32>
    %c0_141 = arith.constant 0 : index
    %c0_142 = arith.constant 0 : index
    %c83 = arith.constant 83 : index
    %650 = vector.load %arg4[%c0_141, %c0_142, %c83] : memref<2x2x512xf32, #tpu.memory_space<vmem>>, vector<2x2x256xf32>
    %c6 = arith.constant 6 : index
    %651 = memref.load %arg2[%c6] : memref<99xf32, #tpu.memory_space<smem>>
    %c55 = arith.constant 55 : index
    %652 = memref.load %arg2[%c55] : memref<99xf32, #tpu.memory_space<smem>>
    %653 = vector.extract_strided_slice %650 {offsets = [0, 0, 0], sizes = [1, 2, 256], strides = [1, 1, 1]} : vector<2x2x256xf32> to vector<1x2x256xf32>
    %654 = vector.shape_cast %653 : vector<1x2x256xf32> to vector<2x256xf32>
    %655 = vector.broadcast %651 : f32 to vector<2x256xf32>
    %656 = arith.mulf %655, %654 : vector<2x256xf32>
    %657 = vector.extract_strided_slice %650 {offsets = [1, 0, 0], sizes = [1, 2, 256], strides = [1, 1, 1]} : vector<2x2x256xf32> to vector<1x2x256xf32>
    %658 = vector.shape_cast %657 : vector<1x2x256xf32> to vector<2x256xf32>
    %659 = vector.broadcast %652 : f32 to vector<2x256xf32>
    %660 = arith.mulf %659, %658 : vector<2x256xf32>
    %c0_143 = arith.constant 0 : index
    %c0_144 = arith.constant 0 : index
    %c99 = arith.constant 99 : index
    %661 = vector.load %arg4[%c0_143, %c0_144, %c99] : memref<2x2x512xf32, #tpu.memory_space<vmem>>, vector<2x2x256xf32>
    %c13 = arith.constant 13 : index
    %662 = memref.load %arg2[%c13] : memref<99xf32, #tpu.memory_space<smem>>
    %c62 = arith.constant 62 : index
    %663 = memref.load %arg2[%c62] : memref<99xf32, #tpu.memory_space<smem>>
    %664 = vector.extract_strided_slice %661 {offsets = [0, 0, 0], sizes = [1, 2, 256], strides = [1, 1, 1]} : vector<2x2x256xf32> to vector<1x2x256xf32>
    %665 = vector.shape_cast %664 : vector<1x2x256xf32> to vector<2x256xf32>
    %666 = vector.broadcast %662 : f32 to vector<2x256xf32>
    %667 = arith.mulf %666, %665 : vector<2x256xf32>
    %668 = vector.extract_strided_slice %661 {offsets = [1, 0, 0], sizes = [1, 2, 256], strides = [1, 1, 1]} : vector<2x2x256xf32> to vector<1x2x256xf32>
    %669 = vector.shape_cast %668 : vector<1x2x256xf32> to vector<2x256xf32>
    %670 = vector.broadcast %663 : f32 to vector<2x256xf32>
    %671 = arith.mulf %670, %669 : vector<2x256xf32>
    %672 = arith.addf %656, %667 : vector<2x256xf32>
    %673 = arith.addf %660, %671 : vector<2x256xf32>
    %c0_145 = arith.constant 0 : index
    %c0_146 = arith.constant 0 : index
    %c115 = arith.constant 115 : index
    %674 = vector.load %arg4[%c0_145, %c0_146, %c115] : memref<2x2x512xf32, #tpu.memory_space<vmem>>, vector<2x2x256xf32>
    %c20 = arith.constant 20 : index
    %675 = memref.load %arg2[%c20] : memref<99xf32, #tpu.memory_space<smem>>
    %c69 = arith.constant 69 : index
    %676 = memref.load %arg2[%c69] : memref<99xf32, #tpu.memory_space<smem>>
    %677 = vector.extract_strided_slice %674 {offsets = [0, 0, 0], sizes = [1, 2, 256], strides = [1, 1, 1]} : vector<2x2x256xf32> to vector<1x2x256xf32>
    %678 = vector.shape_cast %677 : vector<1x2x256xf32> to vector<2x256xf32>
    %679 = vector.broadcast %675 : f32 to vector<2x256xf32>
    %680 = arith.mulf %679, %678 : vector<2x256xf32>
    %681 = vector.extract_strided_slice %674 {offsets = [1, 0, 0], sizes = [1, 2, 256], strides = [1, 1, 1]} : vector<2x2x256xf32> to vector<1x2x256xf32>
    %682 = vector.shape_cast %681 : vector<1x2x256xf32> to vector<2x256xf32>
    %683 = vector.broadcast %676 : f32 to vector<2x256xf32>
    %684 = arith.mulf %683, %682 : vector<2x256xf32>
    %685 = arith.addf %672, %680 : vector<2x256xf32>
    %686 = arith.addf %673, %684 : vector<2x256xf32>
    %c0_147 = arith.constant 0 : index
    %c0_148 = arith.constant 0 : index
    %c131 = arith.constant 131 : index
    %687 = vector.load %arg4[%c0_147, %c0_148, %c131] : memref<2x2x512xf32, #tpu.memory_space<vmem>>, vector<2x2x256xf32>
    %c27 = arith.constant 27 : index
    %688 = memref.load %arg2[%c27] : memref<99xf32, #tpu.memory_space<smem>>
    %c76 = arith.constant 76 : index
    %689 = memref.load %arg2[%c76] : memref<99xf32, #tpu.memory_space<smem>>
    %690 = vector.extract_strided_slice %687 {offsets = [0, 0, 0], sizes = [1, 2, 256], strides = [1, 1, 1]} : vector<2x2x256xf32> to vector<1x2x256xf32>
    %691 = vector.shape_cast %690 : vector<1x2x256xf32> to vector<2x256xf32>
    %692 = vector.broadcast %688 : f32 to vector<2x256xf32>
    %693 = arith.mulf %692, %691 : vector<2x256xf32>
    %694 = vector.extract_strided_slice %687 {offsets = [1, 0, 0], sizes = [1, 2, 256], strides = [1, 1, 1]} : vector<2x2x256xf32> to vector<1x2x256xf32>
    %695 = vector.shape_cast %694 : vector<1x2x256xf32> to vector<2x256xf32>
    %696 = vector.broadcast %689 : f32 to vector<2x256xf32>
    %697 = arith.mulf %696, %695 : vector<2x256xf32>
    %698 = arith.addf %685, %693 : vector<2x256xf32>
    %699 = arith.addf %686, %697 : vector<2x256xf32>
    %c0_149 = arith.constant 0 : index
    %c0_150 = arith.constant 0 : index
    %c147 = arith.constant 147 : index
    %700 = vector.load %arg4[%c0_149, %c0_150, %c147] : memref<2x2x512xf32, #tpu.memory_space<vmem>>, vector<2x2x256xf32>
    %c34 = arith.constant 34 : index
    %701 = memref.load %arg2[%c34] : memref<99xf32, #tpu.memory_space<smem>>
    %c83_151 = arith.constant 83 : index
    %702 = memref.load %arg2[%c83_151] : memref<99xf32, #tpu.memory_space<smem>>
    %703 = vector.extract_strided_slice %700 {offsets = [0, 0, 0], sizes = [1, 2, 256], strides = [1, 1, 1]} : vector<2x2x256xf32> to vector<1x2x256xf32>
    %704 = vector.shape_cast %703 : vector<1x2x256xf32> to vector<2x256xf32>
    %705 = vector.broadcast %701 : f32 to vector<2x256xf32>
    %706 = arith.mulf %705, %704 : vector<2x256xf32>
    %707 = vector.extract_strided_slice %700 {offsets = [1, 0, 0], sizes = [1, 2, 256], strides = [1, 1, 1]} : vector<2x2x256xf32> to vector<1x2x256xf32>
    %708 = vector.shape_cast %707 : vector<1x2x256xf32> to vector<2x256xf32>
    %709 = vector.broadcast %702 : f32 to vector<2x256xf32>
    %710 = arith.mulf %709, %708 : vector<2x256xf32>
    %711 = arith.addf %698, %706 : vector<2x256xf32>
    %712 = arith.addf %699, %710 : vector<2x256xf32>
    %c0_152 = arith.constant 0 : index
    %c0_153 = arith.constant 0 : index
    %c163 = arith.constant 163 : index
    %713 = vector.load %arg4[%c0_152, %c0_153, %c163] : memref<2x2x512xf32, #tpu.memory_space<vmem>>, vector<2x2x256xf32>
    %c41 = arith.constant 41 : index
    %714 = memref.load %arg2[%c41] : memref<99xf32, #tpu.memory_space<smem>>
    %c90 = arith.constant 90 : index
    %715 = memref.load %arg2[%c90] : memref<99xf32, #tpu.memory_space<smem>>
    %716 = vector.extract_strided_slice %713 {offsets = [0, 0, 0], sizes = [1, 2, 256], strides = [1, 1, 1]} : vector<2x2x256xf32> to vector<1x2x256xf32>
    %717 = vector.shape_cast %716 : vector<1x2x256xf32> to vector<2x256xf32>
    %718 = vector.broadcast %714 : f32 to vector<2x256xf32>
    %719 = arith.mulf %718, %717 : vector<2x256xf32>
    %720 = vector.extract_strided_slice %713 {offsets = [1, 0, 0], sizes = [1, 2, 256], strides = [1, 1, 1]} : vector<2x2x256xf32> to vector<1x2x256xf32>
    %721 = vector.shape_cast %720 : vector<1x2x256xf32> to vector<2x256xf32>
    %722 = vector.broadcast %715 : f32 to vector<2x256xf32>
    %723 = arith.mulf %722, %721 : vector<2x256xf32>
    %724 = arith.addf %711, %719 : vector<2x256xf32>
    %725 = arith.addf %712, %723 : vector<2x256xf32>
    %c0_154 = arith.constant 0 : index
    %c0_155 = arith.constant 0 : index
    %c179 = arith.constant 179 : index
    %726 = vector.load %arg4[%c0_154, %c0_155, %c179] : memref<2x2x512xf32, #tpu.memory_space<vmem>>, vector<2x2x256xf32>
    %c48 = arith.constant 48 : index
    %727 = memref.load %arg2[%c48] : memref<99xf32, #tpu.memory_space<smem>>
    %c97_156 = arith.constant 97 : index
    %728 = memref.load %arg2[%c97_156] : memref<99xf32, #tpu.memory_space<smem>>
    %729 = vector.extract_strided_slice %726 {offsets = [0, 0, 0], sizes = [1, 2, 256], strides = [1, 1, 1]} : vector<2x2x256xf32> to vector<1x2x256xf32>
    %730 = vector.shape_cast %729 : vector<1x2x256xf32> to vector<2x256xf32>
    %731 = vector.broadcast %727 : f32 to vector<2x256xf32>
    %732 = arith.mulf %731, %730 : vector<2x256xf32>
    %733 = vector.extract_strided_slice %726 {offsets = [1, 0, 0], sizes = [1, 2, 256], strides = [1, 1, 1]} : vector<2x2x256xf32> to vector<1x2x256xf32>
    %734 = vector.shape_cast %733 : vector<1x2x256xf32> to vector<2x256xf32>
    %735 = vector.broadcast %728 : f32 to vector<2x256xf32>
    %736 = arith.mulf %735, %734 : vector<2x256xf32>
    %737 = arith.addf %724, %732 : vector<2x256xf32>
    %738 = arith.addf %725, %736 : vector<2x256xf32>
    %c3_i32 = arith.constant 3 : i32
    %739 = vector.broadcast %c3_i32 : i32 to vector<1x256xi32>
    %740 = arith.addi %31, %739 : vector<1x256xi32>
    %c0_i32_157 = arith.constant 0 : i32
    %741 = vector.broadcast %c0_i32_157 : i32 to vector<1x256xi32>
    %742 = arith.cmpi sge, %740, %741 : vector<1x256xi32>
    %c3_i32_158 = arith.constant 3 : i32
    %743 = vector.broadcast %c3_i32_158 : i32 to vector<1x256xi32>
    %744 = arith.addi %31, %743 : vector<1x256xi32>
    %c16_i32_159 = arith.constant 16 : i32
    %745 = vector.broadcast %c16_i32_159 : i32 to vector<1x256xi32>
    %746 = arith.cmpi slt, %744, %745 : vector<1x256xi32>
    %747 = arith.andi %742, %746 : vector<1x256xi1>
    %748 = arith.addf %737, %738 : vector<2x256xf32>
    %cst_160 = arith.constant 0.000000e+00 : f32
    %749 = vector.shape_cast %747 : vector<1x256xi1> to vector<1x256xi1>
    %750 = vector.broadcast %749 : vector<1x256xi1> to vector<2x256xi1>
    %751 = vector.broadcast %cst_160 : f32 to vector<2x256xf32>
    %752 = arith.select %750, %748, %751 : vector<2x256xi1>, vector<2x256xf32>
    %753 = arith.addf %134, %237 : vector<2x256xf32>
    %754 = arith.addf %340, %443 : vector<2x256xf32>
    %755 = arith.addf %546, %649 : vector<2x256xf32>
    %756 = arith.addf %753, %754 : vector<2x256xf32>
    %757 = arith.addf %755, %752 : vector<2x256xf32>
    %758 = arith.addf %756, %757 : vector<2x256xf32>
    %c98_161 = arith.constant 98 : index
    %759 = memref.load %arg2[%c98_161] : memref<99xf32, #tpu.memory_space<smem>>
    %760 = vector.broadcast %759 : f32 to vector<2x256xf32>
    %761 = arith.addf %758, %760 : vector<2x256xf32>
    %cst_162 = arith.constant 0.000000e+00 : f32
    %762 = vector.broadcast %cst_162 : f32 to vector<2x256xf32>
    %763 = arith.subf %762, %761 : vector<2x256xf32>
    %764 = math.exp %763 : vector<2x256xf32>
    %cst_163 = arith.constant 1.000000e+00 : f32
    %765 = vector.broadcast %cst_163 : f32 to vector<2x256xf32>
    %766 = arith.addf %765, %764 : vector<2x256xf32>
    %767 = tpu.reciprocal %766 : vector<2x256xf32> -> vector<2x256xf32>
    %768 = vector.shape_cast %767 : vector<2x256xf32> to vector<2x1x256xf32>
    %769 = vector.broadcast %768 : vector<2x1x256xf32> to vector<2x4x256xf32>
    %770 = arith.mulf %0, %769 : vector<2x4x256xf32>
    %c0_164 = arith.constant 0 : index
    %c0_165 = arith.constant 0 : index
    %c0_166 = arith.constant 0 : index
    %771 = vector.load %arg3[%c0_164, %c0_165, %c0_166] : memref<2x4x256xf32, #tpu.memory_space<vmem>>, vector<2x4x256xf32>
    tpu.vector_store %arg3[%c0_164, %c0_165, %c0_166], %770 {strides = array<i32>} : memref<2x4x256xf32, #tpu.memory_space<vmem>>, vector<2x4x256xf32>,
    return
  }
  func.func @transform_0(%arg0: i32) -> (i32, i32, i32) {
    %c0_i32 = arith.constant 0 : i32
    %c0_i32_0 = arith.constant 0 : i32
    %c0_i32_1 = arith.constant 0 : i32
    return %arg0, %c0_i32, %c0_i32_0 : i32, i32, i32
  }
  func.func @transform_1(%arg0: i32) -> i32 {
    %c0_i32 = arith.constant 0 : i32
    %c0_i32_0 = arith.constant 0 : i32
    return %c0_i32 : i32
  }
  func.func @transform_2(%arg0: i32) -> (i32, i32, i32) {
    %c0_i32 = arith.constant 0 : i32
    %c0_i32_0 = arith.constant 0 : i32
    %c0_i32_1 = arith.constant 0 : i32
    return %arg0, %c0_i32, %c0_i32_0 : i32, i32, i32
  }
}

</mosaic_0001>

<bundles_post_ra>
// kernel: tpu_custom_call.1
= control target key start
LH: loop header
LB: loop body
LE: loop exit
PB: predicated region body
PF: predicated region fallthrough
CT: control target
= control target key end

     0   :  { %7 = vsyncpa [#allocation4], 0  ;;  %s2268_s0 = inlined_call_operand.hbm [shape: f32[2,4,256], index: 0, kind: input, shape index: {}]   ;;  %s2269_s1 = inlined_call_operand.hbm [shape: f32[99], index: 1, kind: input, shape index: {}]   ;;  %s2270_s2 = inlined_call_operand.hbm [shape: f32[2,4,256], index: 2, kind: output, shape index: {}]  }
   0x1   :  { %8 = vsyncpa [#allocation6], 0 }
   0x2   :  { %9 = vsyncpa [#allocation5], 0  ;;  %s14_s11 = sshll.u32 %s2268_s0, 4  ;;  %s1616_s12 = smov [#allocation3]   ;;  %s15_s11 = int_to_ptr.hbm [resolvable:$true] %s14_s11 }
   0x3   :  { %s16_s13 = sshll.u32 %s1616_s12, 4  ;;  %s28_s16 = sshll.u32 %s2269_s1, 4  ;;  %s17_s13 = int_to_ptr.vmem [resolvable:$true] %s16_s13  ;;  %s29_s16 = int_to_ptr.hbm [resolvable:$true] %s28_s16 }
   0x4   :  { %s1617_s17 = smov 128   ;;  %s1618_s18 = smov 8  }
   0x5   :  { %22 = dma.hbm_to_vmem [thread:$0]  %s15_s11, 256, %s17_s13, [#allocation4], %s1617_s17, %s1617_s17, %s1618_s18  }
   0x6   :  { %s1619_s19 = smov [#allocation7]  }
   0x7   :  { %31 = dma.hbm_to_smem %s29_s16, 16, %s1619_s19, [#allocation6]  }
   0x8   :  { %1610 = dma.done.wait [#allocation4], 256  }
   0x9   :  { %1611 = vsyncadd [#allocation4], 4294967040 }
   0xa   :  { %1612 = dma.done.wait [#allocation6], 16  }
   0xb   :  { %1613 = vsyncadd [#allocation6], 4294967280 }
   0xc   :  { %40 = sfence }
   0xd   :  { %v1658_v0 = vld [vmem:[#allocation3] sm:$0xff]  ;;  %v1660_v1 = vld [vmem:[#allocation3 + $0x8] sm:$0xff]  ;;  %v1620_v2 = vmov 0.0   ;;  %vm56_vm0 = vcmask 1043456   ;;  %vm138_vm1 = vcmask 1041408   ;;  %vm146_vm2 = vcmask 1041409  }
   0xe   :  { %45 = vst [vmem:[#allocation1] ss:$2 sm:$0xff] %v1658_v0  ;;  %vm148_vm3 = vcmask 1043459   ;;  %vm150_vm4 = vcmask 1045509   ;;  %s1676_s0 = sld [smem:[#allocation7 + $0x15]]  ;;  %vm152_vm5 = vcmask 1047559  }
   0xf   :  { %49 = vst [vmem:[#allocation1 + $0x10] ss:$2 sm:$0xff] %v1660_v1  ;;  %s1679_s1 = sld [smem:[#allocation7 + $0xe]]  ;;  %s1621_s24 = smov 80   ;;  %vm219_vm6 = vcmask 916480   ;;  %vm240_vm7 = vcmask 785408  }
  0x10   :  { %128 = vst [vmem:[#allocation2] sm:$0x3] %v1620_v2  ;;  %s1427_s20 = sld [smem:[#allocation7 + $0x7]]  ;;  %s1622_s25 = smov 96   ;;  %vm261_vm8 = vcmask 654336   ;;  %vm284_vm9 = vcmask 523264  }
  0x11   :  { %129 = vst [vmem:[#allocation2 + $0x8] sm:$0x3] %v1620_v2  ;;  %s1684_s21 = sld [smem:[#allocation7 + $0x23]]  ;;  %s1623_s27 = smov 112   ;;  %vm305_vm10 = vcmask 392192   ;;  %vm326_vm11 = vcmask 261120  }
  0x12   :  { %130 = vst [vmem:[#allocation2 + $0x6] sm:$0x3] %v1620_v2  ;;  %s1686_s22 = sld [smem:[#allocation7 + $0x2a]]  ;;  %s1624_s30 = smov 48   ;;  %vm361_vm12 = vcmask 416768   ;;  %vm522_vm13 = vcmask 408576  }
  0x13   :  { %131 = vst [vmem:[#allocation2 + $0xe] sm:$0x3] %v1620_v2  ;;  %s1433_s23 = sld [smem:[#allocation7 + $0x1c]]  ;;  %s1625_s3 = smov 32  }
  0x14   :  { %s1699_s26 = sld [smem:[#allocation7 + $0xf]]  ;;  %s1626_s5 = smov 64  }
  0x15   :  { %v46_v3 = vld.sshfl [vmem:[#allocation1] sm:$0xff pattern:$0x75316420]  ;;  %v47_v4 = vld.sshfl [vmem:[#allocation1 + $0x8] sm:$0xff pattern:$0x75316420] }
  0x16   :  { %v50_v5 = vld.sshfl [vmem:[#allocation1 + $0x10] sm:$0xff pattern:$0x75316420]  ;;  %v51_v6 = vld.sshfl [vmem:[#allocation1 + $0x18] sm:$0xff pattern:$0x75316420] }
  0x17   :  { %v57_v7 = vsel %vm56_vm0, %v46_v3, -inf  ;;  %v64_v8 = vsel %vm56_vm0, %v47_v4, -inf  ;;  %v71_v9 = vsel %vm56_vm0, %v50_v5, -inf  ;;  %v78_v10 = vsel %vm56_vm0, %v51_v6, -inf  ;;  %85 = vst [vmem:[#allocation1] ss:$2 sm:$0xff] %v1658_v0 }
  0x18   :  { %v58_v11 = vrot.slane %v57_v7, 4  ;;  %v65_v12 = vrot.slane %v64_v8, 4  ;;  %v72_v13 = vrot.slane %v71_v9, 4  ;;  %v79_v14 = vrot.slane %v78_v10, 4  ;;  %89 = vst [vmem:[#allocation1 + $0x10] ss:$2 sm:$0xff] %v1660_v1 }
  0x19   :  { %s1445_s28 = sld [smem:[#allocation7 + $0x16]] }
  0x1a   :  { %v59_v15 = vmax.f32 %v57_v7, %v58_v11  ;;  %v66_v16 = vmax.f32 %v64_v8, %v65_v12  ;;  %v73_v17 = vmax.f32 %v71_v9, %v72_v13  ;;  %v80_v18 = vmax.f32 %v78_v10, %v79_v14  ;;  %s1441_s29 = sld [smem:[#allocation7 + $0x8]] }
  0x1b   :  { %s1449_s4 = sld [smem:[#allocation7 + $0x24]] }
  0x1c   :  { %v60_v19 = vrot.slane %v59_v15, 2  ;;  %v67_v20 = vrot.slane %v66_v16, 2  ;;  %v74_v21 = vrot.slane %v73_v17, 2  ;;  %v81_v22 = vrot.slane %v80_v18, 2  ;;  %s1430_s6 = sld [smem:[#allocation7 + $0x3f]] }
  0x1d   :  { %s1447_s7 = sld [smem:[#allocation7 + $0x1d]] }
  0x1e   :  { %v61_v23 = vmax.f32 %v59_v15, %v60_v19  ;;  %v68_v24 = vmax.f32 %v66_v16, %v67_v20  ;;  %v75_v25 = vmax.f32 %v73_v17, %v74_v21  ;;  %v82_v26 = vmax.f32 %v80_v18, %v81_v22  ;;  %v86_v27 = vld.sshfl [vmem:[#allocation1] sm:$0xff pattern:$0x75316420]  ;;  %v87_v28 = vld.sshfl [vmem:[#allocation1 + $0x8] sm:$0xff pattern:$0x75316420] }
  0x1f   :  { %v90_v29 = vld.sshfl [vmem:[#allocation1 + $0x10] sm:$0xff pattern:$0x75316420]  ;;  %v91_v30 = vld.sshfl [vmem:[#allocation1 + $0x18] sm:$0xff pattern:$0x75316420]  ;;  %v253_v17 = vstv %s1676_s0  ;;  %v232_v18 = vstv %s1679_s1  ;;  %v211_v19 = vstv %s1427_s20 }
  0x20   :  { %v62_v31 = vrot.slane %v61_v23, 1  ;;  %v69_v32 = vrot.slane %v68_v24, 1  ;;  %v76_v33 = vrot.slane %v75_v25, 1  ;;  %v83_v34 = vrot.slane %v82_v26, 1  ;;  %s1432_s8 = sld [smem:[#allocation7 + $0x46]] }
  0x21   :  { %v96_v35 = vsel %vm56_vm0, %v86_v27, 0.0  ;;  %v103_v36 = vsel %vm56_vm0, %v87_v28, 0.0  ;;  %v110_v37 = vsel %vm56_vm0, %v90_v29, 0.0  ;;  %v117_v45 = vsel %vm56_vm0, %v91_v30, 0.0  ;;  %s1434_s9 = sld [smem:[#allocation7 + $0x4d]] }
  0x22   :  { %v63_v38 = vmax.f32 %v61_v23, %v62_v31  ;;  %v70_v39 = vmax.f32 %v68_v24, %v69_v32  ;;  %v77_v40 = vmax.f32 %v75_v25, %v76_v33  ;;  %v84_v41 = vmax.f32 %v82_v26, %v83_v34  ;;  %s1428_s10 = sld [smem:[#allocation7 + $0x38]] }
  0x23   :  { %v97_v42 = vrot.slane %v96_v35, 4  ;;  %v104_v43 = vrot.slane %v103_v36, 4  ;;  %v111_v44 = vrot.slane %v110_v37, 4  ;;  %v118_v48 = vrot.slane %v117_v45, 4  ;;  %s1438_s11 = sld [smem:[#allocation7 + $0x5b]] }
  0x24   :  { %v136_v46 = vrot.slane %v70_v39, 6  ;;  %v137_v47 = vrot.slane %v84_v41, 6  ;;  %v297_v31 = vstv %s1684_s21  ;;  %v318_v32 = vstv %s1686_s22  ;;  %s1442_s12 = sld [smem:[#allocation7 + $0x39]] }
  0x25   :  { %v98_v49 = vadd.f32 %v97_v42, %v96_v35  ;;  %v105_v50 = vadd.f32 %v104_v43, %v103_v36  ;;  %v112_v53 = vadd.f32 %v111_v44, %v110_v37  ;;  %v119_v54 = vadd.f32 %v118_v48, %v117_v45  ;;  %s1436_s13 = sld [smem:[#allocation7 + $0x54]] }
  0x26   :  { %v139_v51 = vsel %vm138_vm1, %v63_v38, %v136_v46  ;;  %v140_v52 = vsel %vm138_vm1, %v77_v40, %v137_v47  ;;  %v276_v33 = vstv %s1433_s23  ;;  %v398_v42 = vstv %s1699_s26  ;;  %s1446_s14 = sld [smem:[#allocation7 + $0x47]] }
  0x27   :  { %v145_v55 = vrot.slane %v140_v52, 7  ;;  %v99_v56 = vrot.slane %v98_v49, 2  ;;  %v106_v57 = vrot.slane %v105_v50, 2  ;;  %v113_v58 = vrot.slane %v112_v53, 2  ;;  %s1448_s15 = sld [smem:[#allocation7 + $0x4e]] }
  0x28   :  { %v120_v59 = vrot.slane %v119_v54, 2  ;;  %v418_v43 = vstv %s1445_s28  ;;  %v378_v44 = vstv %s1441_s29  ;;  %v440_v52 = vstv %s1447_s7  ;;  %s1444_s16 = sld [smem:[#allocation7 + $0x40]] }
  0x29   :  { %v147_v60 = vsel %vm146_vm2, %v145_v55, %v139_v51  ;;  %v100_v61 = vadd.f32 %v99_v56, %v98_v49  ;;  %v107_v62 = vadd.f32 %v106_v57, %v105_v50  ;;  %v114_v2 = vadd.f32 %v113_v58, %v112_v53  ;;  %s1452_s19 = sld [smem:[#allocation7 + $0x5c]] }
  0x2a   :  { %v149_v63 = vsel %vm148_vm3, %v145_v55, %v147_v60  ;;  %v121_v3 = vadd.f32 %v120_v59, %v119_v54  ;;  %v460_v49 = vstv %s1449_s4  ;;  %v234_v51 = vstv %s1430_s6  ;;  %s1451_s0 = sld [smem:[#allocation7 + $0x2b]] }
  0x2b   :  { %v151_v4 = vsel %vm150_vm4, %v145_v55, %v149_v63  ;;  %v101_v5 = vrot.slane %v100_v61, 1  ;;  %v108_v6 = vrot.slane %v107_v62, 1  ;;  %v115_v8 = vrot.slane %v114_v2, 1  ;;  %s1450_s1 = sld [smem:[#allocation7 + $0x55]] }
  0x2c   :  { %v153_v7 = vsel %vm152_vm5, %v145_v55, %v151_v4  ;;  %v122_v9 = vrot.slane %v121_v3, 1  ;;  %v255_v56 = vstv %s1432_s8  ;;  %v278_v58 = vstv %s1434_s9  ;;  %s1457_s20 = sld [smem:[#allocation7 + $0x10]] }
  0x2d   :  { %155 = vst [vmem:[#allocation2 + $0x2] sm:$0xf] %v153_v7  ;;  %v109_v10 = vadd.f32 %v108_v6, %v107_v62  ;;  %v102_v11 = vadd.f32 %v101_v5, %v100_v61  ;;  %v116_v12 = vadd.f32 %v115_v8, %v114_v2  ;;  %v213_v59 = vstv %s1428_s10  ;;  %s1456_s21 = sld [smem:[#allocation7 + $0x3a]] }
  0x2e   :  { %v123_v13 = vadd.f32 %v122_v9, %v121_v3  ;;  %v320_v63 = vstv %s1438_s11  ;;  %v380_v3 = vstv %s1442_s12  ;;  %v299_v4 = vstv %s1436_s13  ;;  %s1455_s22 = sld [smem:[#allocation7 + $0x9]] }
  0x2f   :  { %v125_v14 = vmul.f32 0.25, %v109_v10  ;;  %v126_v15 = vmul.f32 0.25, %v116_v12  ;;  %v124_v20 = vmul.f32 0.25, %v102_v11  ;;  %v420_v8 = vstv %s1446_s14  ;;  %s1460_s23 = sld [smem:[#allocation7 + $0x48]] }
  0x30   :  { %v127_v16 = vmul.f32 0.25, %v123_v13  ;;  %v442_v10 = vstv %s1448_s15  ;;  %v400_v11 = vstv %s1444_s16  ;;  %s1459_s26 = sld [smem:[#allocation7 + $0x17]] }
  0x31   :  { %v160_v21 = vrot.slane %v125_v14, 6  ;;  %s1458_s28 = sld [smem:[#allocation7 + $0x41]] }
  0x32   :  { %v161_v22 = vrot.slane %v127_v16, 6  ;;  %v480_v16 = vstv %s1451_s0  ;;  %s1463_s29 = sld [smem:[#allocation7 + $0x25]] }
  0x33   :  { %v162_v28 = vsel %vm138_vm1, %v124_v20, %v160_v21  ;;  %s1462_s4 = sld [smem:[#allocation7 + $0x4f]] }
  0x34   :  { %v1690_v23 = vld [vmem:[#allocation2] sm:$0x3f]  ;;  %v163_v24 = vsel %vm138_vm1, %v126_v15, %v161_v22  ;;  %v482_v15 = vstv %s1452_s19  ;;  %v559_v22 = vstv %s1457_s20  ;;  %s1461_s6 = sld [smem:[#allocation7 + $0x1e]] }
  0x35   :  { %v254_v25 = vmul.f32 %v253_v17, %v1690_v23  ;;  %v233_v26 = vmul.f32 %v232_v18, %v1690_v23  ;;  %v212_v27 = vmul.f32 %v211_v19, %v1690_v23  ;;  %v166_v29 = vrot.slane %v163_v24, 7  ;;  %v272_v30 = vld [vmem:[#allocation2 + $0x2] sm:$0x3f]  ;;  %s1466_s7 = sld [smem:[#allocation7 + $0x5d]] }
  0x36   :  { %v298_v36 = vmul.f32 %v297_v31, %v272_v30  ;;  %v319_v37 = vmul.f32 %v318_v32, %v272_v30  ;;  %v277_v39 = vmul.f32 %v276_v33, %v272_v30  ;;  %v1711_v41 = vld [vmem:[#allocation2] sm:$0x3f]  ;;  %v462_v17 = vstv %s1450_s1  ;;  %s1465_s8 = sld [smem:[#allocation7 + $0x2c]] }
  0x37   :  { %258 = vrot.lane.b32.xlu2 %v254_v25, %s1621_s24  ;;  %237 = vrot.lane.b32.xlu1 %v233_v26, %s1622_s25  ;;  %v167_v34 = vsel %vm146_vm2, %v166_v29, %v162_v28  ;;  %v399_v45 = vmul.f32 %v398_v42, %v1711_v41  ;;  %v419_v46 = vmul.f32 %v418_v43, %v1711_v41  ;;  %v436_v48 = vld [vmem:[#allocation2 + $0x2] sm:$0x3f]  ;;  %v541_v25 = vstv %s1456_s21  ;;  %s1464_s9 = sld [smem:[#allocation7 + $0x56]] }
  0x38   :  { %216 = vrot.lane.b32.xlu0 %v212_v27, %s1623_s27  ;;  %v168_v35 = vsel %vm148_vm3, %v166_v29, %v167_v34  ;;  %v379_v47 = vmul.f32 %v378_v44, %v1711_v41  ;;  %v461_v53 = vmul.f32 %v460_v49, %v436_v48  ;;  %v441_v55 = vmul.f32 %v440_v52, %v436_v48  ;;  %v1745_v21 = vld [vmem:[#allocation2] sm:$0x3f]  ;;  %s1471_s10 = sld [smem:[#allocation7 + $0x11]] }
  0x39   :  { %v169_v38 = vsel %vm150_vm4, %v166_v29, %v168_v35  ;;  %v481_v19 = vmul.f32 %v480_v16, %v436_v48  ;;  %v539_v26 = vstv %s1455_s22  ;;  %v560_v27 = vmul.f32 %v559_v22, %v1745_v21  ;;  %s1470_s11 = sld [smem:[#allocation7 + $0x3b]]  ;;  %v1767_v52 = vld [vmem:[#allocation2] sm:$0x3f] }
  0x3a   :  { %v170_v40 = vsel %vm152_vm5, %v166_v29, %v169_v38  ;;  %v540_v29 = vmul.f32 %v539_v26, %v1745_v21  ;;  %v581_v30 = vstv %s1460_s23  ;;  %v579_v31 = vstv %s1459_s26  ;;  %s1469_s12 = sld [smem:[#allocation7 + $0xa]] }
  0x3b   :  { %173 = vst [vmem:[#allocation2 + $0xa] sm:$0xf] %v170_v40  ;;  %v561_v32 = vstv %s1458_s28  ;;  %v580_v34 = vmul.f32 %v579_v31, %v1745_v21  ;;  %v601_v40 = vstv %s1461_s6  ;;  %s1474_s13 = sld [smem:[#allocation7 + $0x49]]  ;;  %vm683_vm4 = vcmask 400384  }
  0x3c   :  { %s1473_s14 = sld [smem:[#allocation7 + $0x18]] }
  0x3d   :  { %s1472_s15 = sld [smem:[#allocation7 + $0x42]] }
  0x3e   :  { %s1477_s16 = sld [smem:[#allocation7 + $0x26]] }
  0x3f   :  { %302 = vrot.lane.b32.xlu2 %v298_v36, %s1624_s30  ;;  %323 = vrot.lane.b32.xlu1 %v319_v37, %s1625_s3  ;;  %v597_v36 = vld [vmem:[#allocation2 + $0x2] sm:$0x3f]  ;;  %v621_v37 = vstv %s1463_s29  ;;  %s1476_s19 = sld [smem:[#allocation7 + $0x50]] }
  0x40   :  { %281 = vrot.lane.b32.xlu0 %v277_v39, %s1626_s5  ;;  %v603_v39 = vstv %s1462_s4  ;;  %v622_v42 = vmul.f32 %v621_v37, %v597_v36  ;;  %v602_v44 = vmul.f32 %v601_v40, %v597_v36  ;;  %s1475_s0 = sld [smem:[#allocation7 + $0x1f]] }
  0x41   :  { %s1484_s1 = sld [smem:[#allocation7 + $0x3c]] }
  0x42   :  { %v1720_v50 = vld [vmem:[#allocation2 + $0x8] sm:$0x3f]  ;;  %s1483_s20 = sld [smem:[#allocation7 + $0xb]] }
  0x43   :  { %v235_v54 = vmul.f32 %v234_v51, %v1720_v50  ;;  %v273_v57 = vld [vmem:[#allocation2 + $0xa] sm:$0x3f]  ;;  %v256_v60 = vmul.f32 %v255_v56, %v1720_v50  ;;  %v214_v62 = vmul.f32 %v213_v59, %v1720_v50  ;;  %s1478_s21 = sld [smem:[#allocation7 + $0x57]] }
  0x44   :  { %v279_v61 = vmul.f32 %v278_v58, %v273_v57  ;;  %v1731_v2 = vld [vmem:[#allocation2 + $0x8] sm:$0x3f]  ;;  %v321_v5 = vmul.f32 %v320_v63, %v273_v57  ;;  %v300_v7 = vmul.f32 %v299_v4, %v273_v57  ;;  %v700_v57 = vstv %s1469_s12  ;;  %v738_v63 = vld [vmem:[#allocation2 + $0x2] sm:$0xf]  ;;  %s1485_s22 = sld [smem:[#allocation7 + $0x12]] }
  0x45   :  { %v381_v6 = vmul.f32 %v380_v3, %v1731_v2  ;;  %v437_v9 = vld [vmem:[#allocation2 + $0xa] sm:$0x3f]  ;;  %v421_v12 = vmul.f32 %v420_v8, %v1731_v2  ;;  %v401_v14 = vmul.f32 %v400_v11, %v1731_v2  ;;  %v742_v3 = vstv %s1473_s14  ;;  %s1480_s23 = sld [smem:[#allocation7 + $0x5e]] }
  0x46   :  { %v443_v13 = vmul.f32 %v442_v10, %v437_v9  ;;  %v483_v18 = vmul.f32 %v482_v15, %v437_v9  ;;  %v463_v20 = vmul.f32 %v462_v17, %v437_v9  ;;  %v1747_v24 = vld [vmem:[#allocation2 + $0x8] sm:$0x3f]  ;;  %v760_v9 = vld [vmem:[#allocation2 + $0x2] sm:$0x3f]  ;;  %v784_v10 = vstv %s1477_s16  ;;  %s1479_s26 = sld [smem:[#allocation7 + $0x2d]] }
  0x47   :  { %403 = vrot.lane.b32.xlu2 %v399_v45, %s1622_s25  ;;  %423 = vrot.lane.b32.xlu1 %v419_v46, %s1621_s24  ;;  %v542_v28 = vmul.f32 %v541_v25, %v1747_v24  ;;  %v582_v33 = vmul.f32 %v581_v30, %v1747_v24  ;;  %v562_v35 = vmul.f32 %v561_v32, %v1747_v24  ;;  %v598_v38 = vld [vmem:[#allocation2 + $0xa] sm:$0x3f]  ;;  %v643_v45 = vstv %s1466_s7  ;;  %s1488_s28 = sld [smem:[#allocation7 + $0x4a]] }
  0x48   :  { %383 = vrot.lane.b32.xlu0 %v379_v47, %s1623_s27  ;;  %v604_v43 = vmul.f32 %v603_v39, %v598_v38  ;;  %v641_v46 = vstv %s1465_s8  ;;  %v623_v47 = vstv %s1464_s9  ;;  %v644_v48 = vmul.f32 %v643_v45, %v598_v38  ;;  %v761_v11 = vld [vmem:[#allocation2 + $0xa] sm:$0x3f]  ;;  %s1487_s29 = sld [smem:[#allocation7 + $0x19]] }
  0x49   :  { %v642_v49 = vmul.f32 %v641_v46, %v597_v36  ;;  %v624_v51 = vmul.f32 %v623_v47, %v598_v38  ;;  %v785_v15 = vmul.f32 %v784_v10, %v760_v9  ;;  %v860_v22 = vstv %s1483_s20  ;;  %s1486_s4 = sld [smem:[#allocation7 + $0x43]] }
  0x4a   :  { %v880_v32 = vstv %s1485_s22  ;;  %s1810_s6 = sld [smem:[#allocation7]] }
  0x4b   :  { %s1814_s7 = sld [smem:[#allocation7 + $0x27]] }
  0x4c   :  { %v804_v36 = vstv %s1479_s26  ;;  %s1490_s8 = sld [smem:[#allocation7 + $0x51]] }
  0x4d   :  { %v805_v40 = vmul.f32 %v804_v36, %v760_v9  ;;  %s1489_s9 = sld [smem:[#allocation7 + $0x20]] }
  0x4e   :  { %v902_v45 = vstv %s1487_s29  ;;  %s1839_s12 = sld [smem:[#allocation7 + $0xc]] }
  0x4f   :  { %465 = vrot.lane.b32.xlu2 %v461_v53, %s1624_s30  ;;  %245 = vrot.lane.b32.xlu1 %v235_v54, %s1622_s25  ;;  %v720_v53 = vstv %s1471_s10  ;;  %v1769_v54 = vld [vmem:[#allocation2 + $0x8] sm:$0x3f]  ;;  %s1830_s10 = sld [smem:[#allocation7 + $0x31]] }
  0x50   :  { %445 = vrot.lane.b32.xlu0 %v441_v55, %s1626_s5  ;;  %v702_v55 = vstv %s1470_s11  ;;  %v721_v58 = vmul.f32 %v720_v53, %v1767_v52  ;;  %s1835_s11 = sld [smem:[#allocation7 + $0x3d]] }
  0x51   :  { %v703_v59 = vmul.f32 %v702_v55, %v1769_v54  ;;  %s1853_s14 = sld [smem:[#allocation7 + $0x1]] }
  0x52   :  { %s1860_s16 = sld [smem:[#allocation7 + $0x5f]] }
  0x53   :  { %s1900_s20 = sld [smem:[#allocation7 + $0x1a]] }
  0x54   :  { %s1934_s22 = sld [smem:[#allocation7 + $0x28]] }
  0x55   :  { %s1946_s26 = sld [smem:[#allocation7 + $0x21]] }
  0x56   :  { %s1454_s29 = sld [smem:[#allocation7 + $0x33]] }
  0x57   :  { %266 = vrot.lane.b32.xlu2 %v256_v60, %s1621_s24  ;;  %289 = vrot.lane.b32.xlu1 %v279_v61, %s1626_s5  ;;  %v701_v60 = vmul.f32 %v700_v57, %v1767_v52  ;;  %v739_v61 = vld [vmem:[#allocation2 + $0xa] sm:$0xf]  ;;  %v205_v57 = vstv %s1810_s6  ;;  %s1628_s6 = smov 50  }
  0x58   :  { %224 = vrot.lane.b32.xlu0 %v214_v62, %s1623_s27  ;;  %v744_v62 = vstv %s1474_s13  ;;  %s1843_s13 = sld [smem:[#allocation7 + $0x58]] }
  0x5f   :  { %331 = vrot.lane.b32.xlu2 %v321_v5, %s1625_s3  ;;  %390 = vrot.lane.b32.xlu1 %v381_v6, %s1623_s27  ;;  %v722_v5 = vstv %s1472_s15  ;;  %v745_v6 = vmul.f32 %v744_v62, %v739_v61  ;;  %s1855_s15 = sld [smem:[#allocation7 + $0x13]] }
  0x60   :  { %310 = vrot.lane.b32.xlu0 %v300_v7, %s1624_s30  ;;  %v743_v7 = vmul.f32 %v742_v3, %v738_v63  ;;  %v723_v8 = vmul.f32 %v722_v5, %v1769_v54  ;;  %v922_v63 = vstv %s1489_s9  ;;  %v206_v3 = vmul.f32 %v205_v57, %v1690_v23  ;;  %s2016_s9 = sld [smem:[#allocation7 + $0xd]] }
  0x61   :  { %v207_v23 = vstv %s1830_s10  ;;  %s1512_s10 = sld [smem:[#allocation7 + $0x3e]] }
  0x67   :  { %430 = vrot.lane.b32.xlu2 %v421_v12, %s1621_s24  ;;  %452 = vrot.lane.b32.xlu1 %v443_v13, %s1626_s5  ;;  %v766_v12 = vstv %s1476_s19  ;;  %s1876_s19 = sld [smem:[#allocation7 + $0x2e]] }
  0x68   :  { %410 = vrot.lane.b32.xlu0 %v401_v14, %s1622_s25  ;;  %v764_v14 = vstv %s1475_s0  ;;  %v767_v16 = vmul.f32 %v766_v12, %v761_v11  ;;  %s1884_s0 = sld [smem:[#allocation7 + $0x32]] }
  0x69   :  { %v765_v17 = vmul.f32 %v764_v14, %v760_v9  ;;  %v1864_v14 = vld [vmem:[#allocation2 + $0x8] sm:$0x3f] }
  0x6f   :  { %492 = vrot.lane.b32.xlu2 %v483_v18, %s1625_s3  ;;  %485 = vrot.lane.b32.xlu1 %v481_v19, %s1625_s3  ;;  %v1790_v18 = vld [vmem:[#allocation2 + $0x8] sm:$0x3f]  ;;  %v862_v19 = vstv %s1484_s1  ;;  %s1896_s1 = sld [smem:[#allocation7 + $0x4b]] }
  0x70   :  { %472 = vrot.lane.b32.xlu0 %v463_v20, %s1624_s30  ;;  %v1792_v20 = vld [vmem:[#allocation2] sm:$0x3f] }
  0x71   :  { %v861_v30 = vmul.f32 %v860_v22, %v1792_v20  ;;  %v881_v38 = vmul.f32 %v880_v32, %v1792_v20 }
  0x77   :  { %564 = vrot.lane.b32.xlu2 %v560_v27, %s1622_s25  ;;  %551 = vrot.lane.b32.xlu1 %v542_v28, %s1623_s27  ;;  %v786_v27 = vstv %s1478_s21  ;;  %s1910_s21 = sld [smem:[#allocation7 + $0x44]] }
  0x78   :  { %544 = vrot.lane.b32.xlu0 %v540_v29, %s1623_s27  ;;  %v863_v29 = vmul.f32 %v862_v19, %v1790_v18  ;;  %v787_v31 = vmul.f32 %v786_v27, %v761_v11 }
  0x7f   :  { %591 = vrot.lane.b32.xlu2 %v582_v33, %s1621_s24  ;;  %584 = vrot.lane.b32.xlu1 %v580_v34, %s1621_s24  ;;  %v806_v33 = vstv %s1480_s23  ;;  %s1940_s23 = sld [smem:[#allocation7 + $0x52]] }
  0x80   :  { %571 = vrot.lane.b32.xlu0 %v562_v35, %s1622_s25  ;;  %v807_v39 = vmul.f32 %v806_v33, %v761_v11 }
  0x87   :  { %626 = vrot.lane.b32.xlu2 %v622_v42, %s1624_s30  ;;  %613 = vrot.lane.b32.xlu1 %v604_v43, %s1626_s5  ;;  %v1817_v42 = vld [vmem:[#allocation2 + $0xa] sm:$0x3f]  ;;  %v904_v43 = vstv %s1488_s28  ;;  %s1453_s28 = sld [smem:[#allocation7 + $0x2]] }
  0x88   :  { %606 = vrot.lane.b32.xlu0 %v602_v44, %s1626_s5  ;;  %v1819_v44 = vld [vmem:[#allocation2 + $0x2] sm:$0x3f] }
  0x89   :  { %v903_v53 = vmul.f32 %v902_v45, %v1819_v44  ;;  %v923_v9 = vmul.f32 %v922_v63, %v1819_v44 }
  0x8f   :  { %653 = vrot.lane.b32.xlu2 %v644_v48, %s1625_s3  ;;  %646 = vrot.lane.b32.xlu1 %v642_v49, %s1625_s3  ;;  %v882_v48 = vstv %s1486_s4  ;;  %s1627_s4 = smov 51  }
  0x90   :  { %633 = vrot.lane.b32.xlu0 %v624_v51, %s1624_s30  ;;  %v905_v51 = vmul.f32 %v904_v43, %v1817_v42  ;;  %v883_v55 = vmul.f32 %v882_v48, %v1790_v18 }
  0x91   :  { %v1771_v56 = vpop.permute.xlu2 %258 }
  0x92   :  { %v260_v12 = vrot.slane %v1771_v56, 2 }
  0x97   :  { %725 = vrot.lane.b32.xlu2 %v721_v58, %s1622_s25  ;;  %712 = vrot.lane.b32.xlu1 %v703_v59, %s1623_s27  ;;  %v942_v59 = vstv %s1814_s7  ;;  %s1468_s7 = sld [smem:[#allocation7 + $0x34]] }
  0x98   :  { %705 = vrot.lane.b32.xlu0 %v701_v60, %s1623_s27  ;;  %v924_v60 = vstv %s1490_s8  ;;  %s1467_s8 = sld [smem:[#allocation7 + $0x3]] }
  0x99   :  { %v1779_v4 = vpop.permute.xlu2 %302 }
  0x9a   :  { %v304_v43 = vrot.slane %v1779_v4, 6 }
  0x9f   :  { %754 = vrot.lane.b32.xlu2 %v745_v6, %s1621_s24  ;;  %747 = vrot.lane.b32.xlu1 %v743_v7, %s1621_s24  ;;  %v943_v7 = vmul.f32 %v942_v59, %v1819_v44 }
  0xa0   :  { %732 = vrot.lane.b32.xlu0 %v723_v8, %s1622_s25  ;;  %v925_v8 = vmul.f32 %v924_v60, %v1817_v42  ;;  %v964_v60 = vstv %s1860_s16  ;;  %s2046_s16 = sld [smem:[#allocation7 + $0x1b]] }
  0xa1   :  { %v1785_v13 = vpop.permute.xlu2 %403 }
  0xa7   :  { %789 = vrot.lane.b32.xlu2 %v785_v15, %s1624_s30  ;;  %776 = vrot.lane.b32.xlu1 %v767_v16, %s1626_s5  ;;  %v1023_v15 = vstv %s1835_s11  ;;  %v1867_v16 = vld [vmem:[#allocation2] sm:$0x3f]  ;;  %s2018_s11 = sld [smem:[#allocation7 + $0x59]] }
  0xa8   :  { %769 = vrot.lane.b32.xlu0 %v765_v17, %s1626_s5  ;;  %v1021_v17 = vstv %s1839_s12  ;;  %s2022_s12 = sld [smem:[#allocation7 + $0x60]] }
  0xa9   :  { %v1794_v25 = vpop.permute.xlu2 %465  ;;  %v1796_v26 = vpop.permute.xlu1 %237 }
  0xaa   :  { %v217_v28 = vpop.permute.xlu0 %216  ;;  %v239_v10 = vrot.slane %v1796_v26, 2 }
  0xab   :  { %v218_v58 = vrot.slane %v217_v28, 2 }
  0xac   :  { %v241_v19 = vsel %vm240_vm7, %v1796_v26, %v239_v10  ;;  %v1022_v26 = vmul.f32 %v1021_v17, %v1867_v16  ;;  %v965_v17 = vmul.f32 %v964_v60, %v1817_v42 }
  0xad   :  { %v220_v6 = vsel %vm219_vm6, %v217_v28, %v218_v58  ;;  %v1041_v58 = vstv %s1855_s15  ;;  %s2030_s15 = sld [smem:[#allocation7 + $0x2f]] }
  0xae   :  { %v222_v11 = vadd.f32 %v220_v6, %v206_v3 }
  0xaf   :  { %872 = vrot.lane.b32.xlu2 %v863_v29, %s1623_s27  ;;  %865 = vrot.lane.b32.xlu1 %v861_v30, %s1623_s27  ;;  %v944_v29 = vstv %s1843_s13  ;;  %s1629_s13 = smov 49  }
  0xb0   :  { %796 = vrot.lane.b32.xlu0 %v787_v31, %s1624_s30  ;;  %v243_v30 = vadd.f32 %v241_v19, %v222_v11  ;;  %v208_v31 = vmul.f32 %v207_v23, %v1720_v50 }
  0xb1   :  { %v1803_v34 = vpop.permute.xlu2 %266  ;;  %v1805_v35 = vpop.permute.xlu1 %323 }
  0xb2   :  { %v1807_v37 = vpop.permute.xlu0 %281  ;;  %v268_v50 = vrot.slane %v1803_v34, 2 }
  0xb3   :  { %v283_v22 = vrot.slane %v1807_v37, 6 }
  0xb4   :  { %v269_v63 = vsel %vm261_vm8, %v1803_v34, %v268_v50 }
  0xb5   :  { %v285_v45 = vsel %vm284_vm9, %v283_v22, %v1807_v37  ;;  %v374_v22 = vstv %s1884_s0  ;;  %s2058_s0 = sld [smem:[#allocation7 + $0x45]] }
  0xb7   :  { %885 = vrot.lane.b32.xlu2 %v881_v38, %s1622_s25  ;;  %816 = vrot.lane.b32.xlu1 %v807_v39, %s1625_s3  ;;  %v1024_v38 = vmul.f32 %v1023_v15, %v1864_v14  ;;  %v262_v39 = vsel %vm261_vm8, %v1771_v56, %v260_v12 }
  0xb8   :  { %809 = vrot.lane.b32.xlu0 %v805_v40, %s1625_s3  ;;  %v945_v40 = vmul.f32 %v944_v29, %v1817_v42 }
  0xb9   :  { %v1821_v46 = vpop.permute.xlu2 %331  ;;  %v1823_v47 = vpop.permute.xlu1 %423 }
  0xba   :  { %v1825_v49 = vpop.permute.xlu0 %383  ;;  %v333_v12 = vrot.slane %v1821_v46, 6 }
  0xbb   :  { %v385_v3 = vrot.slane %v1825_v49, 2 }
  0xbc   :  { %v334_v42 = vsel %vm326_vm11, %v333_v12, %v1821_v46  ;;  %v1063_v46 = vstv %s1900_s20  ;;  %v1085_v12 = vstv %s1940_s23  ;;  %s2083_s20 = sld [smem:[#allocation7 + $0x22]] }
  0xbd   :  { %s2094_s23 = sld [smem:[#allocation7 + $0x30]] }
  0xbf   :  { %914 = vrot.lane.b32.xlu2 %v905_v51, %s1621_s24  ;;  %907 = vrot.lane.b32.xlu1 %v903_v53, %s1621_s24  ;;  %v264_v51 = vadd.f32 %v262_v39, %v243_v30 }
  0xc0   :  { %892 = vrot.lane.b32.xlu0 %v883_v55, %s1622_s25  ;;  %v372_v55 = vstv %s1853_s14  ;;  %s2024_s14 = sld [smem:[#allocation7 + $0x14]] }
  0xc1   :  { %v1841_v61 = vpop.permute.xlu2 %430  ;;  %v246_v62 = vpop.permute.xlu1 %245  ;;  %v287_v37 = vadd.f32 %v285_v45, %v264_v51  ;;  %v373_v10 = vmul.f32 %v372_v55, %v1711_v41  ;;  %v386_v41 = vsel %vm219_vm6, %v1825_v49, %v385_v3  ;;  %v1065_v49 = vstv %s1896_s1  ;;  %s2079_s1 = sld [smem:[#allocation7 + $0x29]] }
  0xc2   :  { %v1846_v5 = vpop.permute.xlu0 %445  ;;  %v247_v33 = vrot.slane %v246_v62, 2  ;;  %v1043_v45 = vstv %s1910_s21  ;;  %v425_v51 = vrot.slane %v1823_v47, 2  ;;  %s2089_s21 = sld [smem:[#allocation7 + $0x35]] }
  0xc3   :  { %v388_v39 = vadd.f32 %v386_v41, %v373_v10 }
  0xc4   :  { %v248_v56 = vsel %vm240_vm7, %v246_v62, %v247_v33  ;;  %v306_v62 = vsel %vm305_vm10, %v304_v43, %v1779_v4  ;;  %v1042_v4 = vmul.f32 %v1041_v58, %v1867_v16  ;;  %v405_v33 = vrot.slane %v1785_v13, 2 }
  0xc5   :  { %v308_v19 = vadd.f32 %v306_v62, %v287_v37  ;;  %v447_v58 = vrot.slane %v1846_v5, 6  ;;  %v426_v3 = vsel %vm261_vm8, %v1823_v47, %v425_v51  ;;  %v467_v47 = vrot.slane %v1794_v25, 6 }
  0xc7   :  { %947 = vrot.lane.b32.xlu2 %v943_v7, %s1624_s30  ;;  %934 = vrot.lane.b32.xlu1 %v925_v8, %s1626_s5  ;;  %v962_v8 = vstv %s1876_s19  ;;  %s2054_s19 = sld [smem:[#allocation7 + $0x4c]] }
  0xc8   :  { %927 = vrot.lane.b32.xlu0 %v923_v9, %s1626_s5  ;;  %v325_v9 = vrot.slane %v1805_v35, 6  ;;  %v963_v30 = vmul.f32 %v962_v8, %v1819_v44  ;;  %v1931_v44 = vld [vmem:[#allocation2 + $0xa] sm:$0x3f] }
  0xc9   :  { %v1873_v27 = vpop.permute.xlu2 %492  ;;  %v290_v28 = vpop.permute.xlu1 %289 }
  0xca   :  { %v225_v32 = vpop.permute.xlu0 %224  ;;  %v291_v57 = vrot.slane %v290_v28, 6 }
  0xcb   :  { %v226_v36 = vrot.slane %v225_v32, 2 }
  0xcc   :  { %v292_v34 = vsel %vm284_vm9, %v291_v57, %v290_v28  ;;  %v327_v28 = vsel %vm326_vm11, %v325_v9, %v1805_v35  ;;  %v1937_v35 = vld [vmem:[#allocation2 + $0x2] sm:$0x3f]  ;;  %v432_v57 = vrot.slane %v1841_v61, 2  ;;  %v448_v9 = vsel %vm284_vm9, %v447_v58, %v1846_v5 }
  0xcd   :  { %v227_v48 = vsel %vm219_vm6, %v225_v32, %v226_v36  ;;  %v535_v58 = vstv %s1454_s29  ;;  %s1510_s29 = sld [smem:[#allocation7 + $0x37]] }
  0xce   :  { %v229_v53 = vadd.f32 %v227_v48, %v208_v31  ;;  %v406_v48 = vsel %vm240_vm7, %v1785_v13, %v405_v33  ;;  %v1044_v13 = vmul.f32 %v1043_v45, %v1864_v14  ;;  %v433_v8 = vsel %vm261_vm8, %v1841_v61, %v432_v57 }
  0xcf   :  { %1033 = vrot.lane.b32.xlu2 %v1024_v38, %s1623_s27  ;;  %1026 = vrot.lane.b32.xlu1 %v1022_v26, %s1623_s27  ;;  %v375_v38 = vmul.f32 %v374_v22, %v1731_v2  ;;  %v329_v26 = vadd.f32 %v327_v28, %v308_v19  ;;  %v408_v60 = vadd.f32 %v406_v48, %v388_v39  ;;  %v1083_v61 = vstv %s1946_s26  ;;  %s1522_s26 = sld [smem:[#allocation7 + $0x61]] }
  0xd0   :  { %v250_v59 = vadd.f32 %v248_v56, %v229_v53  ;;  %954 = vrot.lane.b32.xlu0 %v945_v40, %s1624_s30  ;;  %v1066_v56 = vmul.f32 %v1065_v49, %v1931_v44  ;;  %v1084_v33 = vmul.f32 %v1083_v61, %v1937_v35 }
  0xd1   :  { %v1907_v6 = vpop.permute.xlu2 %564  ;;  %v391_v7 = vpop.permute.xlu1 %390 }
  0xd2   :  { %v271_v11 = vadd.f32 %v269_v63, %v250_v59  ;;  %v311_v23 = vpop.permute.xlu0 %310  ;;  %v392_v31 = vrot.slane %v391_v7, 2  ;;  %v1064_v59 = vmul.f32 %v1063_v46, %v1937_v35 }
  0xd3   :  { %v312_v15 = vrot.slane %v311_v23, 6 }
  0xd4   :  { %v294_v29 = vadd.f32 %v292_v34, %v271_v11  ;;  %v393_v2 = vsel %vm219_vm6, %v391_v7, %v392_v31  ;;  %v1103_v11 = vstv %s1934_s22  ;;  %v1086_v31 = vmul.f32 %v1085_v12, %v1931_v44  ;;  %s2091_s22 = sld [smem:[#allocation7 + $0x4]] }
  0xd5   :  { %v313_v32 = vsel %vm305_vm10, %v312_v15, %v311_v23  ;;  %v395_v62 = vadd.f32 %v393_v2, %v375_v38  ;;  %v428_v23 = vadd.f32 %v426_v3, %v408_v60  ;;  %v1104_v22 = vmul.f32 %v1103_v11, %v1937_v35 }
  0xd6   :  { %v315_v36 = vadd.f32 %v313_v32, %v294_v29  ;;  %v494_v29 = vrot.slane %v1873_v27, 6 }
  0xd7   :  { %1046 = vrot.lane.b32.xlu2 %v1042_v4, %s1622_s25  ;;  %974 = vrot.lane.b32.xlu1 %v965_v17, %s1625_s3  ;;  %v450_v17 = vadd.f32 %v448_v9, %v428_v23 }
  0xd8   :  { %v336_v40 = vadd.f32 %v334_v42, %v315_v36  ;;  %967 = vrot.lane.b32.xlu0 %v963_v30, %s1625_s3  ;;  %v468_v36 = vsel %vm305_vm10, %v467_v47, %v1794_v25 }
  0xd9   :  { %v1943_v43 = vpop.permute.xlu2 %591  ;;  %v453_v50 = vpop.permute.xlu1 %452  ;;  %v470_v38 = vadd.f32 %v468_v36, %v450_v17 }
  0xda   :  { %v345_v53 = vadd.f32 %v336_v40, %v329_v26  ;;  %v411_v55 = vpop.permute.xlu0 %410  ;;  %v454_v10 = vrot.slane %v453_v50, 6  ;;  %v495_v26 = vsel %vm326_vm11, %v494_v29, %v1873_v27 }
  0xdb   :  { %v412_v37 = vrot.slane %v411_v55, 2 }
  0xdc   :  { %351 = vst [vmem:[#allocation1] ss:$4 sm:$0xff] %v345_v53  ;;  %v455_v30 = vsel %vm284_vm9, %v454_v10, %v453_v50 }
  0xdd   :  { %v413_v63 = vsel %vm240_vm7, %v411_v55, %v412_v37 }
  0xde   :  { %v415_v7 = vadd.f32 %v413_v63, %v395_v62 }
  0xdf   :  { %1075 = vrot.lane.b32.xlu2 %v1066_v56, %s1621_s24  ;;  %1068 = vrot.lane.b32.xlu1 %v1064_v59, %s1621_s24  ;;  %v533_v56 = vstv %s1453_s28  ;;  %s1520_s28 = sld [smem:[#allocation7 + $0x5a]] }
  0xe0   :  { %v435_v4 = vadd.f32 %v433_v8, %v415_v7  ;;  %1053 = vrot.lane.b32.xlu0 %v1044_v13, %s1622_s25  ;;  %v534_v59 = vmul.f32 %v533_v56, %v1745_v21  ;;  %v536_v7 = vmul.f32 %v535_v58, %v1747_v24  ;;  %v566_v8 = vrot.slane %v1907_v6, 2 }
  0xe1   :  { %v1969_v34 = vpop.permute.xlu2 %626  ;;  %v486_v15 = vpop.permute.xlu1 %485  ;;  %v593_v24 = vrot.slane %v1943_v43, 2 }
  0xe2   :  { %v487_v19 = vrot.slane %v486_v15, 6  ;;  %v473_v5 = vpop.permute.xlu0 %472  ;;  %v457_v32 = vadd.f32 %v455_v30, %v435_v4  ;;  %v567_v61 = vsel %vm240_vm7, %v1907_v6, %v566_v8  ;;  %v1182_v8 = vstv %s2016_s9 }
  0xe3   :  { %v474_v41 = vrot.slane %v473_v5, 6  ;;  %v354_v45 = vld.sshfl [vmem:[#allocation1 + $0x10] sm:$0xff pattern:$0x73625140] }
  0xe4   :  { %v488_v28 = vsel %vm326_vm11, %v487_v19, %v486_v15  ;;  %v353_v48 = vld.sshfl [vmem:[#allocation1 + $0x8] sm:$0xff pattern:$0x73625140]  ;;  %v352_v51 = vld.sshfl [vmem:[#allocation1] sm:$0xff pattern:$0x73625140] }
  0xe5   :  { %v475_v42 = vsel %vm305_vm10, %v474_v41, %v473_v5  ;;  %v490_v39 = vadd.f32 %v488_v28, %v470_v38  ;;  %v594_v41 = vsel %vm261_vm8, %v1943_v43, %v593_v24 }
  0xe6   :  { %v477_v49 = vadd.f32 %v475_v42, %v457_v32 }
  0xe7   :  { %1108 = vrot.lane.b32.xlu2 %v1104_v22, %s1624_s30  ;;  %1095 = vrot.lane.b32.xlu1 %v1086_v31, %s1626_s5  ;;  %v628_v31 = vrot.slane %v1969_v34, 6 }
  0xe8   :  { %v497_v40 = vadd.f32 %v495_v26, %v477_v49  ;;  %1088 = vrot.lane.b32.xlu0 %v1084_v33, %s1626_s5 }
  0xe9   :  { %v1986_v46 = vpop.permute.xlu2 %653  ;;  %v552_v25 = vpop.permute.xlu1 %551 }
  0xea   :  { %v506_v2 = vadd.f32 %v497_v40, %v490_v39  ;;  %v545_v50 = vpop.permute.xlu0 %544  ;;  %v553_v37 = vrot.slane %v552_v25, 2  ;;  %v655_v38 = vrot.slane %v1986_v46, 6  ;;  %v629_v39 = vsel %vm305_vm10, %v628_v31, %v1969_v34 }
  0xeb   :  { %v546_v57 = vrot.slane %v545_v50, 2 }
  0xec   :  { %512 = vst [vmem:[#allocation1] ss:$4 sm:$0xff] %v506_v2  ;;  %v554_v9 = vsel %vm219_vm6, %v552_v25, %v553_v37 }
  0xed   :  { %v547_v13 = vsel %vm219_vm6, %v545_v50, %v546_v57  ;;  %v556_v15 = vadd.f32 %v554_v9, %v536_v7  ;;  %v2026_v7 = vld [vmem:[#allocation2] sm:$0x3f]  ;;  %v1105_v9 = vstv %s2018_s11  ;;  %s1412_s11 = sshll.u32 %s2270_s2, 4  ;;  %s1413_s11 = int_to_ptr.hbm [resolvable:$true] %s1412_s11 }
  0xee   :  { %v549_v23 = vadd.f32 %v547_v13, %v534_v59  ;;  %v696_v59 = vstv %s1468_s7  ;;  %v694_v13 = vstv %s1467_s8  ;;  %s1633_s7 = smov [#allocation8]  }
  0xef   :  { %359 = vrot.lane.b32.xlu2 %v354_v45, %s1627_s4  ;;  %357 = vrot.lane.b32.xlu1 %v353_v48, %s1627_s4  ;;  %v656_v45 = vsel %vm326_vm11, %v655_v38, %v1986_v46  ;;  %s1410_s8 = sshll.u32 %s1633_s7, 4  ;;  %s1411_s8 = int_to_ptr.vmem [resolvable:$true] %s1410_s8 }
  0xf0   :  { %355 = vrot.lane.b32.xlu0 %v352_v51, %s1627_s4  ;;  %v569_v5 = vadd.f32 %v567_v61, %v549_v23  ;;  %s1631_s4 = smov 46  }
  0xf1   :  { %v1988_v27 = vpop.permute.xlu2 %725  ;;  %v585_v53 = vpop.permute.xlu1 %584 }
  0xf2   :  { %v572_v55 = vpop.permute.xlu0 %571  ;;  %v586_v10 = vrot.slane %v585_v53, 2 }
  0xf3   :  { %v515_v60 = vld.sshfl [vmem:[#allocation1 + $0x10] sm:$0xff pattern:$0x73625140]  ;;  %v514_v62 = vld.sshfl [vmem:[#allocation1 + $0x8] sm:$0xff pattern:$0x73625140] }
  0xf4   :  { %v573_v63 = vrot.slane %v572_v55, 2  ;;  %v513_v3 = vld.sshfl [vmem:[#allocation1] sm:$0xff pattern:$0x73625140]  ;;  %v587_v17 = vsel %vm261_vm8, %v585_v53, %v586_v10  ;;  %v697_v10 = vmul.f32 %v696_v59, %v1769_v54  ;;  %v1183_v54 = vmul.f32 %v1182_v8, %v2026_v7 }
  0xf5   :  { %v589_v30 = vadd.f32 %v587_v17, %v569_v5 }
  0xf6   :  { %v574_v4 = vsel %vm240_vm7, %v572_v55, %v573_v63 }
  0xf7   :  { %520 = vrot.lane.b32.xlu2 %v515_v60, %s1628_s6  ;;  %518 = vrot.lane.b32.xlu1 %v514_v62, %s1628_s6  ;;  %v576_v22 = vadd.f32 %v574_v4, %v556_v15  ;;  %v727_v15 = vrot.slane %v1988_v27, 2 }
  0xf8   :  { %516 = vrot.lane.b32.xlu0 %v513_v3, %s1628_s6  ;;  %v1184_v3 = vstv %s1512_s10  ;;  %s1632_s6 = smov 45  }
  0xf9   :  { %v614_v11 = vpop.permute.xlu1 %613  ;;  %v1996_v12 = vpop.permute.xlu2 %754  ;;  %v596_v36 = vadd.f32 %v594_v41, %v576_v22  ;;  %v728_v41 = vsel %vm240_vm7, %v1988_v27, %v727_v15 }
  0xfa   :  { %v607_v21 = vpop.permute.xlu0 %606  ;;  %v615_v19 = vrot.slane %v614_v11, 6 }
  0xfb   :  { %v608_v47 = vrot.slane %v607_v21, 6 }
  0xfc   :  { %v616_v32 = vsel %vm284_vm9, %v615_v19, %v614_v11  ;;  %v2033_v11 = vld [vmem:[#allocation2 + $0x8] sm:$0x3f]  ;;  %v1106_v19 = vmul.f32 %v1105_v9, %v1931_v44 }
  0xfd   :  { %v609_v29 = vsel %vm284_vm9, %v608_v47, %v607_v21  ;;  %v618_v26 = vadd.f32 %v616_v32, %v596_v36  ;;  %v695_v21 = vmul.f32 %v694_v13, %v1767_v52  ;;  %v1185_v47 = vmul.f32 %v1184_v3, %v2033_v11 }
  0xfe   :  { %v611_v6 = vadd.f32 %v609_v29, %v589_v30  ;;  %v756_v52 = vrot.slane %v1996_v12, 6  ;;  %v1202_v32 = vstv %s2024_s14  ;;  %v1123_v36 = vstv %s2030_s15 }
  0xff   :  { %v1203_v27 = vmul.f32 %v1202_v32, %v2026_v7  ;;  %v854_v32 = vstv %s2091_s22 }
 0x100   :  { %v631_v2 = vadd.f32 %v629_v39, %v611_v6 }
 0x101   :  { %v647_v33 = vpop.permute.xlu1 %646  ;;  %v2010_v40 = vpop.permute.xlu2 %789 }
 0x102   :  { %v648_v28 = vrot.slane %v647_v33, 6  ;;  %v634_v42 = vpop.permute.xlu0 %633 }
 0x103   :  { %v635_v49 = vrot.slane %v634_v42, 6 }
 0x104   :  { %v649_v43 = vsel %vm326_vm11, %v648_v28, %v647_v33  ;;  %v1125_v33 = vstv %s2022_s12  ;;  %v757_v28 = vsel %vm261_vm8, %v756_v52, %v1996_v12 }
 0x105   :  { %v636_v25 = vsel %vm305_vm10, %v635_v49, %v634_v42  ;;  %v651_v48 = vadd.f32 %v649_v43, %v631_v2  ;;  %v1126_v43 = vmul.f32 %v1125_v33, %v1931_v44 }
 0x106   :  { %v638_v50 = vadd.f32 %v636_v25, %v618_v26  ;;  %v1124_v25 = vmul.f32 %v1123_v36, %v1937_v35  ;;  %v1226_v35 = vstv %s2054_s19  ;;  %v1286_v36 = vstv %s1522_s26 }
 0x108   :  { %v658_v51 = vadd.f32 %v656_v45, %v638_v50 }
 0x109   :  { %v713_v53 = vpop.permute.xlu1 %712  ;;  %v2020_v34 = vpop.permute.xlu2 %872 }
 0x10a   :  { %v667_v55 = vadd.f32 %v658_v51, %v651_v48  ;;  %v706_v56 = vpop.permute.xlu0 %705  ;;  %v714_v37 = vrot.slane %v713_v53, 2 }
 0x10b   :  { %v707_v63 = vrot.slane %v706_v56, 2 }
 0x10c   :  { %673 = vst [vmem:[#allocation1] ss:$4 sm:$0xff] %v667_v55  ;;  %v715_v23 = vsel %vm219_vm6, %v713_v53, %v714_v37  ;;  %v791_v53 = vrot.slane %v2010_v40, 6  ;;  %v1220_v55 = vld [vmem:[#allocation2 + $0x2] sm:$0x3f] }
 0x10d   :  { %v708_v61 = vsel %vm219_vm6, %v706_v56, %v707_v63  ;;  %v717_v22 = vadd.f32 %v715_v23, %v697_v10  ;;  %v1224_v56 = vstv %s2046_s16  ;;  %v1221_v37 = vld [vmem:[#allocation2 + $0xa] sm:$0x3f] }
 0x10e   :  { %v710_v29 = vadd.f32 %v708_v61, %v695_v21  ;;  %v1225_v63 = vmul.f32 %v1224_v56, %v1220_v55  ;;  %v1264_v61 = vstv %s2079_s1 }
 0x110   :  { %v730_v42 = vadd.f32 %v728_v41, %v710_v29 }
 0x111   :  { %v748_v57 = vpop.permute.xlu1 %747  ;;  %v2040_v24 = vpop.permute.xlu2 %885 }
 0x112   :  { %v733_v58 = vpop.permute.xlu0 %732  ;;  %v749_v31 = vrot.slane %v748_v57, 6 }
 0x113   :  { %v676_v46 = vld.sshfl [vmem:[#allocation1 + $0x10] sm:$0xff pattern:$0x73625140]  ;;  %v675_v60 = vld.sshfl [vmem:[#allocation1 + $0x8] sm:$0xff pattern:$0x73625140] }
 0x114   :  { %681 = vrot.lane.b32.xlu2 %v676_v46, %s1629_s13  ;;  %v674_v62 = vld.sshfl [vmem:[#allocation1] sm:$0xff pattern:$0x73625140]  ;;  %679 = vrot.lane.b32.xlu1 %v675_v60, %s1629_s13  ;;  %v734_v4 = vrot.slane %v733_v58, 2  ;;  %v750_v49 = vsel %vm261_vm8, %v749_v31, %v748_v57  ;;  %v1204_v57 = vstv %s2058_s0  ;;  %v1227_v60 = vmul.f32 %v1226_v35, %v1221_v37 }
 0x115   :  { %677 = vrot.lane.b32.xlu0 %v674_v62, %s1629_s13  ;;  %v752_v45 = vadd.f32 %v750_v49, %v730_v42  ;;  %v792_v62 = vsel %vm305_vm10, %v791_v53, %v2010_v40  ;;  %v1205_v3 = vmul.f32 %v1204_v57, %v2033_v11  ;;  %v856_v31 = vstv %s2089_s21 }
 0x116   :  { %v735_v30 = vsel %vm240_vm7, %v733_v58, %v734_v4  ;;  %v1266_v42 = vstv %s1520_s28  ;;  %v855_v49 = vmul.f32 %v854_v32, %v1792_v20 }
 0x117   :  { %v737_v6 = vadd.f32 %v735_v30, %v717_v22  ;;  %v1265_v22 = vmul.f32 %v1264_v61, %v1220_v55 }
 0x119   :  { %v777_v17 = vpop.permute.xlu1 %776  ;;  %v2068_v50 = vpop.permute.xlu2 %914  ;;  %v759_v12 = vadd.f32 %v757_v28, %v737_v6  ;;  %v874_v6 = vrot.slane %v2020_v34, 2  ;;  %v1284_v28 = vstv %s2094_s23 }
 0x11a   :  { %v770_v5 = vpop.permute.xlu0 %769  ;;  %v778_v38 = vrot.slane %v777_v17, 6 }
 0x11b   :  { %v771_v26 = vrot.slane %v770_v5, 6 }
 0x11c   :  { %1194 = vrot.lane.b32.xlu2 %v1185_v47, %s1623_s27  ;;  %1187 = vrot.lane.b32.xlu1 %v1183_v54, %s1623_s27  ;;  %v779_v48 = vsel %vm284_vm9, %v778_v38, %v777_v17  ;;  %s2071_s27 = sld [smem:[#allocation7 + $0x53]] }
 0x11d   :  { %1115 = vrot.lane.b32.xlu0 %v1106_v19, %s1624_s30  ;;  %v772_v44 = vsel %vm284_vm9, %v771_v26, %v770_v5  ;;  %v781_v58 = vadd.f32 %v779_v48, %v759_v12  ;;  %v1244_v19 = vstv %s2083_s20  ;;  %v1287_v26 = vmul.f32 %v1286_v36, %v1221_v37 }
 0x11e   :  { %v774_v46 = vadd.f32 %v772_v44, %v752_v45  ;;  %v1245_v30 = vmul.f32 %v1244_v19, %v1220_v55  ;;  %v1285_v12 = vmul.f32 %v1284_v28, %v1220_v55  ;;  %v1267_v45 = vmul.f32 %v1266_v42, %v1221_v37 }
 0x11f   :  { %v875_v48 = vsel %vm219_vm6, %v2020_v34, %v874_v6  ;;  %v174_v36 = vlaneseq }
 0x120   :  { %v794_v4 = vadd.f32 %v792_v62, %v774_v46 }
 0x121   :  { %v2064_v39 = vpop.permute.xlu1 %865  ;;  %v2097_v40 = vpop.permute.xlu2 %947  ;;  %v175_v28 = vand.u32 127, %v174_v36 }
 0x122   :  { %v797_v2 = vpop.permute.xlu0 %796  ;;  %v1246_v54 = vstv %s2071_s27  ;;  %v867_v33 = vrot.slane %v2064_v39, 2 }
 0x123   :  { %v798_v51 = vrot.slane %v797_v2, 6  ;;  %v1247_v29 = vmul.f32 %v1246_v54, %v1221_v37 }
 0x124   :  { %1207 = vrot.lane.b32.xlu2 %v1203_v27, %s1622_s25  ;;  %1135 = vrot.lane.b32.xlu1 %v1126_v43, %s1625_s3  ;;  %v857_v27 = vmul.f32 %v856_v31, %v1790_v18  ;;  %v887_v43 = vrot.slane %v2040_v24, 2 }
 0x125   :  { %1128 = vrot.lane.b32.xlu0 %v1124_v25, %s1625_s3  ;;  %v799_v59 = vsel %vm305_vm10, %v798_v51, %v797_v2  ;;  %v868_v25 = vsel %vm219_vm6, %v2064_v39, %v867_v33  ;;  %v916_v39 = vrot.slane %v2068_v50, 6 }
 0x126   :  { %v801_v10 = vadd.f32 %v799_v59, %v781_v58  ;;  %v870_v44 = vadd.f32 %v868_v25, %v855_v49  ;;  %v877_v18 = vadd.f32 %v875_v48, %v857_v27  ;;  %v888_v20 = vsel %vm240_vm7, %v2040_v24, %v887_v43 }
 0x127   :  { %v917_v24 = vsel %vm261_vm8, %v916_v39, %v2068_v50  ;;  %v176_v43 = vadd.s32 128, %v175_v28 }
 0x128   :  { %v890_v56 = vadd.f32 %v888_v20, %v870_v44 }
 0x129   :  { %v817_v13 = vpop.permute.xlu1 %816  ;;  %v2113_v38 = vpop.permute.xlu2 %1033 }
 0x12a   :  { %v818_v8 = vrot.slane %v817_v13, 6  ;;  %v810_v9 = vpop.permute.xlu0 %809 }
 0x12b   :  { %v811_v23 = vrot.slane %v810_v9, 6 }
 0x12c   :  { %v819_v21 = vsel %vm326_vm11, %v818_v8, %v817_v13  ;;  %1236 = vrot.lane.b32.xlu2 %v1227_v60, %s1621_s24  ;;  %1229 = vrot.lane.b32.xlu1 %v1225_v63, %s1621_s24  ;;  %v949_v63 = vrot.slane %v2097_v40, 6  ;;  %s1630_s24 = smov 47  }
 0x12d   :  { %v821_v47 = vadd.f32 %v819_v21, %v801_v10  ;;  %v812_v15 = vsel %vm326_vm11, %v811_v23, %v810_v9  ;;  %1214 = vrot.lane.b32.xlu0 %v1205_v3, %s1622_s25  ;;  %s1495_s25 = sld [smem:[#allocation7 + $0x5]] }
 0x12e   :  { %v814_v17 = vadd.f32 %v812_v15, %v794_v4  ;;  %v950_v21 = vsel %vm305_vm10, %v949_v63, %v2097_v40 }
 0x130   :  { %v828_v5 = vadd.f32 %v821_v47, %v814_v17 }
 0x131   :  { %v908_v52 = vpop.permute.xlu1 %907  ;;  %v2129_v34 = vpop.permute.xlu2 %1046 }
 0x132   :  { %834 = vst [vmem:[#allocation1] ss:$4 sm:$0xff] %v828_v5  ;;  %v893_v41 = vpop.permute.xlu0 %892  ;;  %v909_v35 = vrot.slane %v908_v52, 6 }
 0x133   :  { %v894_v51 = vrot.slane %v893_v41, 2 }
 0x134   :  { %1269 = vrot.lane.b32.xlu2 %v1265_v22, %s1624_s30  ;;  %1256 = vrot.lane.b32.xlu1 %v1247_v29, %s1626_s5  ;;  %v910_v57 = vsel %vm261_vm8, %v909_v35, %v908_v52 }
 0x135   :  { %1249 = vrot.lane.b32.xlu0 %v1245_v30, %s1626_s5  ;;  %v895_v55 = vsel %vm240_vm7, %v893_v41, %v894_v51  ;;  %v912_v62 = vadd.f32 %v910_v57, %v890_v56  ;;  %s1509_s5 = sld [smem:[#allocation7 + $0x6]] }
 0x136   :  { %v897_v58 = vadd.f32 %v895_v55, %v877_v18 }
 0x138   :  { %v919_v3 = vadd.f32 %v917_v24, %v897_v58 }
 0x139   :  { %v935_v2 = vpop.permute.xlu1 %934  ;;  %v2142_v61 = vpop.permute.xlu2 %1075  ;;  %v2146_v41 = vld.sshfl [vmem:[#allocation1] sm:$0xff pattern:$0x73625140]  ;;  %v836_v40 = vld.sshfl [vmem:[#allocation1 + $0x8] sm:$0xff pattern:$0x73625140] }
 0x13a   :  { %v928_v53 = vpop.permute.xlu0 %927  ;;  %v936_v59 = vrot.slane %v935_v2, 6  ;;  %v2150_v32 = vld.sshfl [vmem:[#allocation1 + $0x10] sm:$0xff pattern:$0x73625140] }
 0x13b   :  { %v929_v37 = vrot.slane %v928_v53, 6 }
 0x13c   :  { %1296 = vrot.lane.b32.xlu2 %v1287_v26, %s1625_s3  ;;  %1289 = vrot.lane.b32.xlu1 %v1285_v12, %s1625_s3  ;;  %v937_v9 = vsel %vm284_vm9, %v936_v59, %v935_v2  ;;  %v2162_v2 = vand.u32 15, %v176_v43  ;;  %s1496_s3 = sld [smem:[#allocation7 + $0x36]] }
 0x13d   :  { %1276 = vrot.lane.b32.xlu0 %v1267_v45, %s1624_s30  ;;  %v930_v8 = vsel %vm284_vm9, %v929_v37, %v928_v53  ;;  %v939_v4 = vadd.f32 %v937_v9, %v919_v3  ;;  %v2164_v45 = vand.u32 15, %v175_v28  ;;  %v1015_v3 = vstv %s1495_s25 }
 0x13e   :  { %v932_v10 = vadd.f32 %v930_v8, %v912_v62  ;;  %v338_v44 = vadd.s32 4294967293, %v2162_v2  ;;  %v499_v18 = vadd.s32 4294967294, %v2162_v2 }
 0x13f   :  { %v337_v20 = vadd.s32 4294967293, %v2164_v45  ;;  %v498_v35 = vadd.s32 4294967294, %v2164_v45 }
 0x140   :  { %v952_v5 = vadd.f32 %v950_v21, %v932_v10  ;;  %vm340_vm14 = vcmp.ge.s32.totalorder %v338_v44, 0  ;;  %vm501_vm15 = vcmp.ge.s32.totalorder %v499_v18, 0  ;;  %v1035_v10 = vrot.slane %v2113_v38, 2 }
 0x141   :  { %v2132_v46 = vpop.permute.xlu1 %1026  ;;  %v2154_v6 = vpop.permute.xlu2 %1108  ;;  %vm339_vm1 = vcmp.ge.s32.totalorder %v337_v20, 0  ;;  %vm500_vm3 = vcmp.ge.s32.totalorder %v498_v35, 0  ;;  %v1048_v21 = vrot.slane %v2129_v34, 2 }
 0x142   :  { %v955_v60 = vpop.permute.xlu0 %954  ;;  %v1028_v8 = vrot.slane %v2132_v46, 2  ;;  %v1017_v9 = vstv %s1496_s3 }
 0x143   :  { %v956_v13 = vrot.slane %v955_v60, 6 }
 0x145   :  { %v957_v23 = vsel %vm305_vm10, %v956_v13, %v955_v60 }
 0x146   :  { %v959_v17 = vadd.f32 %v957_v23, %v939_v4  ;;  %v1016_v23 = vmul.f32 %v1015_v3, %v1867_v16  ;;  %v1029_v4 = vsel %vm219_vm6, %v2132_v46, %v1028_v8  ;;  %v1176_v8 = vstv %s1509_s5 }
 0x149   :  { %v975_v47 = vpop.permute.xlu1 %974  ;;  %v360_v25 = vpop.permute.xlu2 %359 }
 0x14a   :  { %v976_v50 = vrot.slane %v975_v47, 6  ;;  %v968_v15 = vpop.permute.xlu0 %967 }
 0x14b   :  { %v969_v54 = vrot.slane %v968_v15, 6 }
 0x14c   :  { %v977_v19 = vsel %vm326_vm11, %v976_v50, %v975_v47  ;;  %v1018_v50 = vmul.f32 %v1017_v9, %v1864_v14  ;;  %v1077_v14 = vrot.slane %v2142_v61, 6 }
 0x14d   :  { %v979_v22 = vadd.f32 %v977_v19, %v959_v17  ;;  %v970_v52 = vsel %vm326_vm11, %v969_v54, %v968_v15  ;;  %v1036_v54 = vsel %vm219_vm6, %v2113_v38, %v1035_v10  ;;  %v1178_v10 = vstv %s1510_s29 }
 0x14e   :  { %v972_v29 = vadd.f32 %v970_v52, %v952_v5  ;;  %v1049_v52 = vsel %vm240_vm7, %v2129_v34, %v1048_v21  ;;  %v1078_v34 = vsel %vm261_vm8, %v1077_v14, %v2142_v61  ;;  %v1177_v21 = vmul.f32 %v1176_v8, %v2026_v7 }
 0x150   :  { %v988_v30 = vadd.f32 %v979_v22, %v972_v29  ;;  %v1031_v22 = vadd.f32 %v1029_v4, %v1016_v23  ;;  %v1038_v29 = vadd.f32 %v1036_v54, %v1018_v50  ;;  %v1179_v54 = vmul.f32 %v1178_v10, %v2033_v11 }
 0x151   :  { %v2148_v31 = vpop.permute.xlu1 %1068  ;;  %v521_v39 = vpop.permute.xlu2 %520 }
 0x152   :  { %v2152_v33 = vpop.permute.xlu0 %1053  ;;  %994 = vst [vmem:[#allocation1] ss:$4 sm:$0xff] %v988_v30  ;;  %v1070_v46 = vrot.slane %v2148_v31, 6 }
 0x153   :  { %v1055_v19 = vrot.slane %v2152_v33, 2 }
 0x154   :  { %v1071_v38 = vsel %vm261_vm8, %v1070_v46, %v2148_v31 }
 0x155   :  { %v1056_v30 = vsel %vm240_vm7, %v2152_v33, %v1055_v19 }
 0x156   :  { %v1058_v28 = vadd.f32 %v1056_v30, %v1038_v29 }
 0x159   :  { %v2156_v42 = vpop.permute.xlu1 %1095  ;;  %v997_v27 = vld.sshfl [vmem:[#allocation1 + $0x10] sm:$0xff pattern:$0x73625140]  ;;  %v996_v26 = vld.sshfl [vmem:[#allocation1 + $0x8] sm:$0xff pattern:$0x73625140] }
 0x15a   :  { %v2158_v49 = vpop.permute.xlu0 %1088  ;;  %1002 = vrot.lane.b32.xlu1 %v997_v27, %s1630_s24  ;;  %1000 = vrot.lane.b32.xlu0 %v996_v26, %s1630_s24  ;;  %v1097_v43 = vrot.slane %v2156_v42, 6 }
 0x15b   :  { %v1090_v36 = vrot.slane %v2158_v49, 6 }
 0x15c   :  { %v1098_v31 = vsel %vm284_vm9, %v1097_v43, %v2156_v42 }
 0x15d   :  { %v1091_v33 = vsel %vm284_vm9, %v1090_v36, %v2158_v49 }
 0x161   :  { %v358_v12 = vpop.permute.xlu1 %357 }
 0x162   :  { %v363_v48 = vsel %vm361_vm12, %v358_v12, %v360_v25  ;;  %v356_v51 = vpop.permute.xlu0 %355  ;;  %840 = vrot.lane.b32.xlu1 %v836_v40, %s1624_s30  ;;  %v1051_v40 = vadd.f32 %v1049_v52, %v1031_v22 }
 0x163   :  { %v362_v53 = vsel %vm361_vm12, %v356_v51, %v358_v12  ;;  %v367_v58 = vsel %vm340_vm14, %v363_v48, 0.0  ;;  %v1110_v48 = vrot.slane %v2154_v6, 6  ;;  %vm1326_vm12 = vcmask 367616  }
 0x164   :  { %v366_v59 = vsel %vm339_vm1, %v362_v53, 0.0  ;;  %v1073_v25 = vadd.f32 %v1071_v38, %v1051_v40  ;;  %v1080_v53 = vadd.f32 %v1078_v34, %v1058_v28 }
 0x165   :  { %v1111_v18 = vsel %vm305_vm10, %v1110_v48, %v2154_v6  ;;  %v995_v6 = vld.sshfl [vmem:[#allocation1] sm:$0xff pattern:$0x73625140] }
 0x166   :  { %v1093_v44 = vadd.f32 %v1091_v33, %v1073_v25  ;;  %v1100_v20 = vadd.f32 %v1098_v31, %v1080_v53 }
 0x169   :  { %v519_v55 = vpop.permute.xlu1 %518 }
 0x16a   :  { %v524_v56 = vsel %vm522_vm13, %v519_v55, %v521_v39  ;;  %v517_v57 = vpop.permute.xlu0 %516 }
 0x16b   :  { %v528_v37 = vsel %vm501_vm15, %v524_v56, 0.0  ;;  %v523_v24 = vsel %vm522_vm13, %v517_v57, %v519_v55 }
 0x16c   :  { %v2171_v60 = vadd.f32 %v528_v37, %v367_v58  ;;  %v527_v62 = vsel %vm500_vm3, %v523_v24, 0.0  ;;  %v1113_v58 = vadd.f32 %v1111_v18, %v1093_v44 }
 0x16d   :  { %v2173_v13 = vadd.f32 %v527_v62, %v366_v59 }
 0x16e   :  { %v682_v63 = vpop.permute.xlu2 %681 }
 0x176   :  { %v2181_v47 = vpop.permute.xlu2 %1194 }
 0x177   :  { %v1196_v23 = vrot.slane %v2181_v47, 2 }
 0x179   :  { %v1197_v22 = vsel %vm219_vm6, %v2181_v47, %v1196_v23 }
 0x17a   :  { %v1199_v11 = vadd.f32 %v1197_v22, %v1179_v54  ;;  %v1141_v22 = vadd.s32 2, %v2164_v45 }
 0x17e   :  { %v1208_v12 = vpop.permute.xlu2 %1207 }
 0x186   :  { %v680_v15 = vpop.permute.xlu1 %679  ;;  %v1237_v49 = vpop.permute.xlu2 %1236 }
 0x187   :  { %v678_v17 = vpop.permute.xlu0 %677  ;;  %v2187_v5 = vsel %vm683_vm4, %v680_v15, %v682_v63  ;;  %v1238_v28 = vrot.slane %v1237_v49, 6 }
 0x188   :  { %v2189_v16 = vsel %vm683_vm4, %v678_v17, %v680_v15  ;;  %v1209_v15 = vrot.slane %v1208_v12, 2 }
 0x189   :  { %v1239_v33 = vsel %vm261_vm8, %v1238_v28, %v1237_v49 }
 0x18a   :  { %v1210_v40 = vsel %vm240_vm7, %v1208_v12, %v1209_v15 }
 0x18e   :  { %v1188_v27 = vpop.permute.xlu1 %1187  ;;  %v1270_v4 = vpop.permute.xlu2 %1269 }
 0x18f   :  { %v1116_v26 = vpop.permute.xlu0 %1115  ;;  %v1189_v9 = vrot.slane %v1188_v27, 2 }
 0x190   :  { %v1117_v51 = vrot.slane %v1116_v26, 6 }
 0x191   :  { %v1190_v50 = vsel %vm219_vm6, %v1188_v27, %v1189_v9  ;;  %vm1165_vm6 = vcmask 375808  }
 0x192   :  { %v1118_v61 = vsel %vm305_vm10, %v1117_v51, %v1116_v26  ;;  %v1192_v29 = vadd.f32 %v1190_v50, %v1177_v21  ;;  %v1271_v51 = vrot.slane %v1270_v4, 6 }
 0x193   :  { %v1120_v57 = vadd.f32 %v1118_v61, %v1100_v20 }
 0x194   :  { %v1212_v26 = vadd.f32 %v1210_v40, %v1192_v29 }
 0x196   :  { %v1136_v35 = vpop.permute.xlu1 %1135  ;;  %v1297_v48 = vpop.permute.xlu2 %1296 }
 0x197   :  { %v1129_v39 = vpop.permute.xlu0 %1128  ;;  %v1137_v55 = vrot.slane %v1136_v35, 6  ;;  %v1298_v61 = vrot.slane %v1297_v48, 6 }
 0x198   :  { %v1130_v56 = vrot.slane %v1129_v39, 6 }
 0x199   :  { %v1138_v37 = vsel %vm326_vm11, %v1137_v55, %v1136_v35  ;;  %v1272_v55 = vsel %vm305_vm10, %v1271_v51, %v1270_v4 }
 0x19a   :  { %v1131_v42 = vsel %vm326_vm11, %v1130_v56, %v1129_v39  ;;  %v1140_v24 = vadd.f32 %v1138_v37, %v1120_v57  ;;  %v1299_v37 = vsel %vm326_vm11, %v1298_v61, %v1297_v48 }
 0x19b   :  { %v1133_v59 = vadd.f32 %v1131_v42, %v1113_v58 }
 0x19d   :  { %v1149_v62 = vadd.f32 %v1140_v24, %v1133_v59 }
 0x19e   :  { %v1230_v63 = vpop.permute.xlu1 %1229 }
 0x19f   :  { %1155 = vst [vmem:[#allocation1] ss:$4 sm:$0xff] %v1149_v62  ;;  %v1215_v3 = vpop.permute.xlu0 %1214  ;;  %v1231_v19 = vrot.slane %v1230_v63, 6 }
 0x1a0   :  { %v1216_v17 = vrot.slane %v1215_v3, 2 }
 0x1a1   :  { %v1232_v27 = vsel %vm261_vm8, %v1231_v19, %v1230_v63  ;;  %v659_v19 = vadd.s32 4294967295, %v2164_v45  ;;  %vm1145_vm8 = vcmp.lt.s32.totalorder %v1141_v22, 16 }
 0x1a2   :  { %v1217_v38 = vsel %vm240_vm7, %v1215_v3, %v1216_v17  ;;  %v1234_v25 = vadd.f32 %v1232_v27, %v1212_v26  ;;  %v660_v3 = vadd.s32 4294967295, %v2162_v2 }
 0x1a3   :  { %v1219_v34 = vadd.f32 %v1217_v38, %v1199_v11  ;;  %vm661_vm7 = vcmp.ge.s32.totalorder %v659_v19, 0 }
 0x1a4   :  { %vm662_vm5 = vcmp.ge.s32.totalorder %v660_v3, 0 }
 0x1a5   :  { %v1241_v53 = vadd.f32 %v1239_v33, %v1219_v34  ;;  %v689_v10 = vsel %vm662_vm5, %v2187_v5, 0.0 }
 0x1a6   :  { %v1158_v52 = vld.sshfl [vmem:[#allocation1 + $0x10] sm:$0xff pattern:$0x73625140]  ;;  %v1157_v46 = vld.sshfl [vmem:[#allocation1 + $0x8] sm:$0xff pattern:$0x73625140]  ;;  %v1257_v14 = vpop.permute.xlu1 %1256 }
 0x1a7   :  { %v1250_v30 = vpop.permute.xlu0 %1249  ;;  %1163 = vrot.lane.b32.xlu0 %v1158_v52, %s1631_s4  ;;  %1161 = vrot.lane.b32.xlu2 %v1157_v46, %s1631_s4  ;;  %v1156_v7 = vld.sshfl [vmem:[#allocation1] sm:$0xff pattern:$0x73625140]  ;;  %v1258_v47 = vrot.slane %v1257_v14, 6  ;;  %v980_v52 = vadd.s32 1, %v2164_v45  ;;  %v1302_v46 = vadd.s32 3, %v2164_v45 }
 0x1a8   :  { %v1251_v36 = vrot.slane %v1250_v30, 6  ;;  %1159 = vrot.lane.b32.xlu1 %v1156_v7, %s1631_s4 }
 0x1a9   :  { %v1259_v12 = vsel %vm284_vm9, %v1258_v47, %v1257_v14  ;;  %vm1306_vm13 = vcmp.lt.s32.totalorder %v1302_v46, 16 }
 0x1aa   :  { %v1252_v43 = vsel %vm284_vm9, %v1251_v36, %v1250_v30  ;;  %v1261_v39 = vadd.f32 %v1259_v12, %v1241_v53  ;;  %vm984_vm9 = vcmp.lt.s32.totalorder %v980_v52, 16  ;;  %v688_v30 = vsel %vm661_vm7, %v2189_v16, 0.0 }
 0x1ab   :  { %v1254_v31 = vadd.f32 %v1252_v43, %v1234_v25  ;;  %v1142_v25 = vadd.s32 2, %v2162_v2  ;;  %v981_v16 = vadd.s32 1, %v2162_v2  ;;  %v1303_v53 = vadd.s32 3, %v2162_v2 }
 0x1ad   :  { %v1274_v58 = vadd.f32 %v1272_v55, %v1254_v31  ;;  %vm1146_vm14 = vcmp.lt.s32.totalorder %v1142_v25, 16  ;;  %vm1307_vm15 = vcmp.lt.s32.totalorder %v1303_v53, 16 }
 0x1ae   :  { %v1290_v44 = vpop.permute.xlu1 %1289 }
 0x1af   :  { %v1277_v18 = vpop.permute.xlu0 %1276  ;;  %998 = vrot.lane.b32.xlu0 %v995_v6, %s1630_s24  ;;  %842 = vrot.lane.b32.xlu2 %v2150_v32, %s1624_s30  ;;  %v1291_v20 = vrot.slane %v1290_v44, 6 }
 0x1b0   :  { %v1278_v35 = vrot.slane %v1277_v18, 6  ;;  %838 = vrot.lane.b32.xlu1 %v2146_v41, %s1624_s30  ;;  %s2242_s30 = sld [smem:[#allocation7 + $0x62]] }
 0x1b1   :  { %v1292_v56 = vsel %vm326_vm11, %v1291_v20, %v1290_v44  ;;  %vm1004_vm11 = vcmask 384000  }
 0x1b2   :  { %v1279_v57 = vsel %vm305_vm10, %v1278_v35, %v1277_v18  ;;  %v1294_v42 = vadd.f32 %v1292_v56, %v1274_v58 }
 0x1b3   :  { %v1281_v49 = vadd.f32 %v1279_v57, %v1261_v39 }
 0x1b5   :  { %v1301_v24 = vadd.f32 %v1299_v37, %v1281_v49 }
 0x1b6   :  { %v1346_v34 = vstv %s2242_s30 }
 0x1b7   :  { %v1310_v32 = vadd.f32 %v1301_v24, %v1294_v42 }
 0x1b9   :  { %1316 = vst [vmem:[#allocation1] ss:$4 sm:$0xff] %v1310_v32 }
 0x1c0   :  { %v1319_v59 = vld.sshfl [vmem:[#allocation1 + $0x10] sm:$0xff pattern:$0x73625140]  ;;  %v1318_v62 = vld.sshfl [vmem:[#allocation1 + $0x8] sm:$0xff pattern:$0x73625140] }
 0x1c1   :  { %1324 = vrot.lane.b32.xlu0 %v1319_v59, %s1632_s6  ;;  %1322 = vrot.lane.b32.xlu2 %v1318_v62, %s1632_s6  ;;  %v1317_v41 = vld.sshfl [vmem:[#allocation1] sm:$0xff pattern:$0x73625140] }
 0x1c9   :  { %1320 = vrot.lane.b32.xlu2 %v1317_v41, %s1632_s6 }
 0x1cc   :  { %v1003_v6 = vpop.permute.xlu1 %1002  ;;  %v1001_v50 = vpop.permute.xlu0 %1000 }
 0x1cd   :  { %v1006_v31 = vsel %vm1004_vm11, %v1001_v50, %v1003_v6 }
 0x1d4   :  { %v841_v8 = vpop.permute.xlu1 %840 }
 0x201   :  { %v1162_v63 = vpop.permute.xlu2 %1161 }
 0x209   :  { %v843_v9 = vpop.permute.xlu2 %842 }
 0x20a   :  { %v845_v23 = vsel %vm305_vm10, %v841_v8, %v843_v9 }
 0x20b   :  { %v1336_v21 = vadd.f32 %v845_v23, %v689_v10 }
 0x20d   :  { %v1340_v4 = vadd.f32 %v1336_v21, %v2171_v60 }
 0x219   :  { %v1164_v15 = vpop.permute.xlu0 %1163 }
 0x21a   :  { %v1160_v17 = vpop.permute.xlu1 %1159  ;;  %v1167_v51 = vsel %vm1165_vm6, %v1162_v63, %v1164_v15 }
 0x21b   :  { %v1323_v54 = vpop.permute.xlu2 %1322  ;;  %v1166_v5 = vsel %vm1165_vm6, %v1160_v17, %v1162_v63  ;;  %v1171_v44 = vsel %vm1146_vm14, %v1167_v51, 0.0 }
 0x21c   :  { %v1170_v7 = vsel %vm1145_vm8, %v1166_v5, 0.0 }
 0x221   :  { %v999_v60 = vpop.permute.xlu0 %998 }
 0x222   :  { %v1005_v29 = vsel %vm1004_vm11, %v999_v60, %v1001_v50  ;;  %v839_v14 = vpop.permute.xlu1 %838 }
 0x223   :  { %v1009_v40 = vsel %vm984_vm9, %v1005_v29, 0.0  ;;  %v844_v45 = vsel %vm305_vm10, %v839_v14, %v841_v8  ;;  %v1321_v38 = vpop.permute.xlu2 %1320  ;;  %vm985_vm10 = vcmp.lt.s32.totalorder %v981_v16, 16  ;;  %vm1388_vm9 = vcmask 1040384  }
 0x224   :  { %v1337_v36 = vadd.f32 %v1170_v7, %v1009_v40  ;;  %v1335_v11 = vadd.f32 %v844_v45, %v688_v30  ;;  %v1327_v28 = vsel %vm1326_vm12, %v1321_v38, %v1323_v54 }
 0x225   :  { %v1331_v27 = vsel %vm1306_vm13, %v1327_v28, 0.0 }
 0x226   :  { %v1339_v47 = vadd.f32 %v1335_v11, %v2173_v13  ;;  %v1341_v26 = vadd.f32 %v1337_v36, %v1331_v27  ;;  %v1010_v13 = vsel %vm985_vm10, %v1006_v31, 0.0 }
 0x227   :  { %v1338_v61 = vadd.f32 %v1171_v44, %v1010_v13 }
 0x228   :  { %v1343_v43 = vadd.f32 %v1341_v26, %v1339_v47 }
 0x22a   :  { %v1347_v48 = vadd.f32 %v1346_v34, %v1343_v43 }
 0x22c   :  { %v1349_v33 = vsub.f32 0.0, %v1347_v48 }
 0x22e   :  { %v1351_v12 = vmul.f32 1.442695, %v1349_v33 }
 0x230   :  { %1542 = vpow2.f32 %v1351_v12 }
 0x233   :  { %v1325_v18 = vpop.permute.xlu0 %1324 }
 0x234   :  { %v1328_v20 = vsel %vm1326_vm12, %v1323_v54, %v1325_v18 }
 0x235   :  { %v1332_v35 = vsel %vm1307_vm15, %v1328_v20, 0.0 }
 0x236   :  { %v1342_v39 = vadd.f32 %v1338_v61, %v1332_v35  ;;  %v1543_v55 = vpop.eup %1542 }
 0x237   :  { %v1355_v58 = vadd.f32 1.0, %v1543_v55 }
 0x238   :  { %v1344_v56 = vadd.f32 %v1342_v39, %v1340_v4 }
 0x239   :  { %1544 = vrcp.f32 %v1355_v58  ;;  %vm1362_vm4 = vweird.f32 %v1355_v58  ;;  %v1368_v23 = vand.u32 2147483648, %v1355_v58  ;;  %v1366_v21 = vand.u32 2147483647, %v1355_v58 }
 0x23a   :  { %v1348_v57 = vadd.f32 %v1346_v34, %v1344_v56 }
 0x23b   :  { %v1369_v54 = vor.u32 1.1754944e-38, %v1368_v23  ;;  %vm1367_vm11 = vcmp.eq.f32.partialorder %v1366_v21, 8.507059e+37 }
 0x23c   :  { %v1350_v49 = vsub.f32 0.0, %v1348_v57 }
 0x23e   :  { %v1353_v37 = vmul.f32 1.442695, %v1350_v49 }
 0x23f   :  { %v1545_v2 = vpop.eup %1544 }
 0x240   :  { %1546 = vpow2.f32 %v1353_v37  ;;  %v1358_v32 = vmul.f32 %v1545_v2, %v1355_v58  ;;  %vm1363_vm1 = vweird.f32 %v1545_v2 }
 0x241   :  { %vm1364_vm5 = vmor %vm1362_vm4, %vm1363_vm1 }
 0x242   :  { %v1359_v59 = vsub.f32 1.0, %v1358_v32 }
 0x244   :  { %v1360_v6 = vmul.f32 %v1545_v2, %v1359_v59 }
 0x246   :  { %v1547_v42 = vpop.eup %1546  ;;  %v1361_v8 = vadd.f32 %v1545_v2, %v1360_v6 }
 0x247   :  { %v1356_v24 = vadd.f32 1.0, %v1547_v42 }
 0x248   :  { %v1365_v15 = vsel %vm1364_vm5, %v1545_v2, %v1361_v8 }
 0x249   :  { %1548 = vrcp.f32 %v1356_v24  ;;  %v1382_v3 = vand.u32 2147483648, %v1356_v24  ;;  %v1380_v10 = vand.u32 2147483647, %v1356_v24  ;;  %vm1376_vm6 = vweird.f32 %v1356_v24 }
 0x24a   :  { %v1370_v52 = vsel %vm1367_vm11, %v1369_v54, %v1365_v15 }
 0x24b   :  { %v1383_v50 = vor.u32 1.1754944e-38, %v1382_v3  ;;  %vm1381_vm8 = vcmp.eq.f32.partialorder %v1380_v10, 8.507059e+37 }
 0x24f   :  { %v1549_v62 = vpop.eup %1548 }
 0x250   :  { %v1372_v41 = vmul.f32 %v1549_v62, %v1356_v24  ;;  %vm1377_vm3 = vweird.f32 %v1549_v62 }
 0x251   :  { %vm1378_vm7 = vmor %vm1376_vm6, %vm1377_vm3 }
 0x252   :  { %v1373_v63 = vsub.f32 1.0, %v1372_v41 }
 0x254   :  { %v1374_v9 = vmul.f32 %v1549_v62, %v1373_v63 }
 0x256   :  { %v1375_v4 = vadd.f32 %v1549_v62, %v1374_v9 }
 0x258   :  { %v1379_v17 = vsel %vm1378_vm7, %v1549_v62, %v1375_v4 }
 0x259   :  { %v1384_v19 = vsel %vm1381_vm8, %v1383_v50, %v1379_v17 }
 0x25a   :  { %v1387_v22 = vrot.slane %v1384_v19, 7 }
 0x25c   :  { %v1389_v46 = vsel %vm1388_vm9, %v1370_v52, %v1387_v22  ;;  %v1390_v5 = vsel %vm146_vm2, %v1370_v52, %v1387_v22 }
 0x25d   :  { %v1391_v60 = vrot.slane %v1390_v5, 1  ;;  %v1393_v29 = vperm.slane %v1389_v46, 1  ;;  %v1392_v14 = vperm.slane %v1389_v46, 0 }
 0x25f   :  { %v1395_v30 = vperm.slane %v1391_v60, 1  ;;  %v1396_v7 = vrot.slane %v1393_v29, 4  ;;  %v1394_v40 = vperm.slane %v1391_v60, 0 }
 0x261   :  { %v1397_v45 = vrot.slane %v1395_v30, 4  ;;  %v1398_v38 = vsel %vm56_vm0, %v1392_v14, %v1396_v7 }
 0x262   :  { %v1402_v36 = vmul.f32 %v1398_v38, %v1658_v0 }
 0x263   :  { %v1399_v11 = vsel %vm56_vm0, %v1394_v40, %v1397_v45 }
 0x264   :  { %v1403_v28 = vmul.f32 %v1399_v11, %v1660_v1  ;;  %1404 = vst [vmem:[#allocation8] sm:$0xff] %v1402_v36 }
 0x266   :  { %1405 = vst [vmem:[#allocation8 + $0x8] sm:$0xff] %v1403_v28 }
 0x267   :  { %1418 = dma.vmem_to_hbm [thread:$0]  %s1411_s8, 256, %s1413_s11, [#allocation5], %s1617_s17, %s1617_s17, %s1618_s18  }
 0x268   :  { %1614 = dma.done.wait [#allocation5], 256  }
 0x269   :  { %1615 = vsyncadd [#allocation5], 4294967040 }
 0x26a   :  { %1423 = vsyncpa [#allocation4], 1 }
 0x26b   :  { %1424 = vsyncpa [#allocation5], 1 }
 0x26c   :  { %1425 = vsyncpa [#allocation6], 1 }

</bundles_post_ra>
